<compile_context>
chip_gen: v6e
topology: v6e:2x2x1
jax: 0.10.0
libtpu: 0.0.40
codegen_flags: <defaults>
</compile_context>

<pallas_src>
import math

import jax
import jax.numpy as jnp
from jax.experimental import pallas as pl
from jax.experimental.pallas import tpu as pltpu  # noqa: F401  (kept for TPU backend)


# ----------------------------- config (small) ------------------------------
B = 2            # batch
S = 8            # sequence length
D = 32           # model / input size
H = 4            # num heads
DH = 8           # head size
HDH = H * DH     # = D here (output projection maps back to input_size)
INNER = 64       # feed-forward inner size
NUM_LAYERS = 2
VOCAB = 11
LN_EPS = 1e-5

OFF_Q = 0
OFF_K = HDH
OFF_V = 2 * HDH


# ------------------------------ Pallas kernel ------------------------------
def _layer_norm(v, g, b):
    mu = jnp.mean(v, axis=-1, keepdims=True)
    var = jnp.mean((v - mu) ** 2, axis=-1, keepdims=True)
    return (v - mu) * jax.lax.rsqrt(var + LN_EPS) * g + b


def encoder_kernel(x0_ref, bias_ref,
                   wqkv_ref, bqkv_ref, wo_ref, bo_ref,
                   g1_ref, be1_ref, w1_ref, b1_ref, w2_ref, b2_ref,
                   g2_ref, be2_ref,
                   outs_ref, attns_ref):
    """Single invocation: runs all layers for the whole batch with resident weights."""
    scale = 1.0 / math.sqrt(DH)

    x = x0_ref[...]                           # (B*S, D)
    key_bias = bias_ref[...][:, None, :]      # (B, 1, S) additive: -1e9 at pad keys

    for li in range(NUM_LAYERS):              # statically unrolled (NUM_LAYERS == 2)
        # ---- fused QKV projection for the whole batch: one (16,32)@(32,96) matmul
        qkv = (jnp.dot(x, wqkv_ref[li], preferred_element_type=jnp.float32)
               + bqkv_ref[li])                # (B*S, 3*H*DH)

        ctx_heads = []
        for h in range(H):                    # per head, but batched over B inside
            q = qkv[:, OFF_Q + h * DH:OFF_Q + (h + 1) * DH].reshape(B, S, DH)
            k = qkv[:, OFF_K + h * DH:OFF_K + (h + 1) * DH].reshape(B, S, DH)
            v = qkv[:, OFF_V + h * DH:OFF_V + (h + 1) * DH].reshape(B, S, DH)

            s = jnp.einsum('bqd,bkd->bqk', q, k,
                           preferred_element_type=jnp.float32) * scale
            s = s + key_bias                  # mask padded keys
            s = s - jnp.max(s, axis=-1, keepdims=True)
            e = jnp.exp(s)
            p = e * pl.reciprocal(jnp.sum(e, axis=-1, keepdims=True), approx=True)

            attns_ref[li, h] = p              # (B, S, S)

            ctx_heads.append(
                jnp.einsum('bqk,bkd->bqd', p, v,
                           preferred_element_type=jnp.float32).reshape(B * S, DH))

        ctx = jnp.concatenate(ctx_heads, axis=-1)                       # (B*S, H*DH)
        attn_out = (jnp.dot(ctx, wo_ref[li], preferred_element_type=jnp.float32)
                    + bo_ref[li])                                       # (B*S, D)

        # ---- residual + LayerNorm (SubLayer.layer_norm)
        y = _layer_norm(attn_out + x, g1_ref[li], be1_ref[li])

        # ---- ResFF: residual feed-forward with its own LayerNorm (dropout=identity)
        hid = jnp.maximum(
            jnp.dot(y, w1_ref[li], preferred_element_type=jnp.float32) + b1_ref[li],
            0.0)
        ff = jnp.dot(hid, w2_ref[li], preferred_element_type=jnp.float32) + b2_ref[li]
        z = _layer_norm(y + ff, g2_ref[li], be2_ref[li])

        outs_ref[li] = z                      # (B*S, D)
        x = z


def _encoder_pallas(x0_2d, mask_bias, p):
    out_shape = (
        jax.ShapeDtypeStruct((NUM_LAYERS, B * S, D), jnp.float32),
        jax.ShapeDtypeStruct((NUM_LAYERS, H, B, S, S), jnp.float32),
    )
    # No grid: one kernel invocation, all inputs/outputs whole-array resident in VMEM
    # (total footprint << 1 MiB, safe on v5e/v6e/v7x default scoped VMEM limits).
    return pl.pallas_call(encoder_kernel, out_shape=out_shape)(
        x0_2d, mask_bias,
        p["wqkv"], p["bqkv"], p["wo"], p["bo"],
        p["g1"], p["be1"], p["w1"], p["b1"], p["w2"], p["b2"],
        p["g2"], p["be2"])


# ------------------------------ JAX glue -----------------------------------
def _timing_signal(length, channels, max_timescale=1000.0):
    # Matches the PyTorch add_timing_signal exactly (computed once as a constant).
    nts = channels // 2
    inv_inc = jnp.exp(-(math.log(max_timescale) / nts)
                      * jnp.arange(nts, dtype=jnp.float32))              # (nts,)
    pos = jnp.arange(length, dtype=jnp.float32)[:, None]                 # (L, 1)
    ang = pos * inv_inc[None, :]                                         # (L, nts)
    pe = jnp.zeros((length, channels), jnp.float32)
    pe = pe.at[:, 0::2].set(jnp.sin(ang))
    pe = pe.at[:, 1::2].set(jnp.cos(ang))
    return pe


PE = _timing_signal(S, D, 1000.0)                                        # constant table


@jax.jit
def encoder_forward(tokens, params):
    # key-padding additive bias: -1e9 where token == 0
    mask_bias = jnp.where(tokens == 0, jnp.float32(-1e9), jnp.float32(0.0))
    word_vec = jnp.take(params["lut"], tokens, axis=0)                   # (B,S,D)
    x0 = word_vec + PE[None, :, :]                                       # outputs[0]

    outs, attns = _encoder_pallas(x0.reshape(B * S, D),
                                  mask_bias.astype(jnp.float32), params)

    outs = outs.reshape(NUM_LAYERS, B, S, D)
    attns = jnp.transpose(attns, (0, 2, 1, 3, 4))                        # (L,B,H,S,S)
    outputs = [x0] + [outs[i] for i in range(NUM_LAYERS)]
    return outputs, attns


# --------------------------- parameter init --------------------------------
def init_params(key):
    def nrm(k, shape, scale=0.02):
        return scale * jax.random.normal(k, shape, jnp.float32)

    ks = jax.random.split(key, 5)
    lut = jax.random.normal(ks[0], (VOCAB, D), jnp.float32)
    lut = lut.at[0].set(0.0)                                             # padding_idx=0

    L = NUM_LAYERS
    return dict(
        lut=lut,
        # per-layer weights stacked along a leading layer axis; q|k|v fused.
        wqkv=nrm(ks[1], (L, D, 3 * HDH)),
        bqkv=jnp.zeros((L, 1, 3 * HDH), jnp.float32),
        wo=nrm(ks[2], (L, HDH, D)),
        bo=jnp.zeros((L, 1, D), jnp.float32),
        g1=jnp.ones((L, 1, D), jnp.float32),
        be1=jnp.zeros((L, 1, D), jnp.float32),
        w1=nrm(ks[3], (L, D, INNER)),
        b1=jnp.zeros((L, 1, INNER), jnp.float32),
        w2=nrm(ks[4], (L, INNER, D)),
        b2=jnp.zeros((L, 1, D), jnp.float32),
        g2=jnp.ones((L, 1, D), jnp.float32),
        be2=jnp.zeros((L, 1, D), jnp.float32),
    )


# ---------------------------------- main ------------------------------------
if __name__ == "__main__":
    root = jax.random.PRNGKey(0)
    k_tok, k_par = jax.random.split(root)

    params = init_params(k_par)

    # token ids in [1, VOCAB), trailing zeros act as padding (exercises the mask)
    tokens = jax.random.randint(k_tok, (B, S), 1, VOCAB, dtype=jnp.int32)
    pad = jnp.arange(S)[None, :] >= jnp.array([[6], [5]])                # lengths 6 and 5
    tokens = jnp.where(pad, 0, tokens)

    outputs, attns = encoder_forward(tokens, params)
    jax.block_until_ready(outputs[-1])
    jax.block_until_ready(attns)

    assert len(outputs) == NUM_LAYERS + 1
    assert outputs[-1].shape == (B, S, D)
    assert attns.shape == (NUM_LAYERS, B, H, S, S)
    print("KERNEL_OK")
</pallas_src>

<mosaic_0001>
module attributes {stable_mosaic.version = 11 : i64} {
  func.func @encoder_kernel(%arg0: memref<16x32xf32, #tpu.memory_space<vmem>>, %arg1: memref<2x8xf32, #tpu.memory_space<vmem>>, %arg2: memref<2x32x96xf32, #tpu.memory_space<vmem>>, %arg3: memref<2x1x96xf32, #tpu.memory_space<vmem>>, %arg4: memref<2x32x32xf32, #tpu.memory_space<vmem>>, %arg5: memref<2x1x32xf32, #tpu.memory_space<vmem>>, %arg6: memref<2x1x32xf32, #tpu.memory_space<vmem>>, %arg7: memref<2x1x32xf32, #tpu.memory_space<vmem>>, %arg8: memref<2x32x64xf32, #tpu.memory_space<vmem>>, %arg9: memref<2x1x64xf32, #tpu.memory_space<vmem>>, %arg10: memref<2x64x32xf32, #tpu.memory_space<vmem>>, %arg11: memref<2x1x32xf32, #tpu.memory_space<vmem>>, %arg12: memref<2x1x32xf32, #tpu.memory_space<vmem>>, %arg13: memref<2x1x32xf32, #tpu.memory_space<vmem>>, %arg14: memref<2x16x32xf32, #tpu.memory_space<vmem>>, %arg15: memref<2x4x2x8x8xf32, #tpu.memory_space<vmem>>) attributes {dimension_semantics = [], scalar_prefetch = 0 : i64, scratch_operands = 0 : i64, tpu.core_type = #tpu.core_type<tc>} {
    %c0 = arith.constant 0 : index
    %c0_0 = arith.constant 0 : index
    %0 = vector.load %arg0[%c0, %c0_0] : memref<16x32xf32, #tpu.memory_space<vmem>>, vector<16x32xf32>
    %c0_1 = arith.constant 0 : index
    %c0_2 = arith.constant 0 : index
    %1 = vector.load %arg1[%c0_1, %c0_2] : memref<2x8xf32, #tpu.memory_space<vmem>>, vector<2x8xf32>
    %2 = vector.shape_cast %1 : vector<2x8xf32> to vector<2x1x8xf32>
    %c0_3 = arith.constant 0 : index
    %c0_4 = arith.constant 0 : index
    %c0_5 = arith.constant 0 : index
    %3 = vector.load %arg2[%c0_3, %c0_4, %c0_5] : memref<2x32x96xf32, #tpu.memory_space<vmem>>, vector<1x32x96xf32>
    %4 = vector.shape_cast %3 : vector<1x32x96xf32> to vector<32x96xf32>
    %cst = arith.constant dense<0.000000e+00> : vector<16x96xf32>
    %5 = tpu.matmul %0, %4, %cst {dimension_numbers = #tpu.dot_dimension_numbers<[1], [0], [0], [1], [0, 0, 1, 1], [], []>} : vector<16x32xf32>, vector<32x96xf32>, vector<16x96xf32> -> vector<16x96xf32>
    %c0_6 = arith.constant 0 : index
    %c0_7 = arith.constant 0 : index
    %c0_8 = arith.constant 0 : index
    %6 = vector.load %arg3[%c0_6, %c0_7, %c0_8] : memref<2x1x96xf32, #tpu.memory_space<vmem>>, vector<1x1x96xf32>
    %7 = vector.shape_cast %6 : vector<1x1x96xf32> to vector<1x96xf32>
    %8 = vector.broadcast %7 : vector<1x96xf32> to vector<16x96xf32>
    %9 = arith.addf %5, %8 : vector<16x96xf32>
    %10 = vector.extract_strided_slice %9 {offsets = [0, 0], sizes = [16, 8], strides = [1, 1]} : vector<16x96xf32> to vector<16x8xf32>
    %11 = vector.shape_cast %10 : vector<16x8xf32> to vector<2x8x8xf32>
    %12 = vector.extract_strided_slice %9 {offsets = [0, 32], sizes = [16, 8], strides = [1, 1]} : vector<16x96xf32> to vector<16x8xf32>
    %13 = vector.shape_cast %12 : vector<16x8xf32> to vector<2x8x8xf32>
    %14 = vector.extract_strided_slice %9 {offsets = [0, 64], sizes = [16, 8], strides = [1, 1]} : vector<16x96xf32> to vector<16x8xf32>
    %15 = vector.shape_cast %14 : vector<16x8xf32> to vector<2x8x8xf32>
    "tpu.trace_start"() <{level = 10 : i32, message = "bqd,bkd->bqk"}> : () -> ()
    %cst_9 = arith.constant dense<0.000000e+00> : vector<2x8x8xf32>
    %16 = tpu.matmul %11, %13, %cst_9 {dimension_numbers = #tpu.dot_dimension_numbers<[2], [2], [1], [1], [0, 0, 0, 1, 1, 1], [0], [0]>} : vector<2x8x8xf32>, vector<2x8x8xf32>, vector<2x8x8xf32> -> vector<2x8x8xf32>
    "tpu.trace_stop"() : () -> ()
    %cst_10 = arith.constant 0.353553385 : f32
    %17 = vector.broadcast %cst_10 : f32 to vector<2x8x8xf32>
    %18 = arith.mulf %16, %17 : vector<2x8x8xf32>
    %19 = vector.broadcast %2 : vector<2x1x8xf32> to vector<2x8x8xf32>
    %20 = arith.addf %18, %19 : vector<2x8x8xf32>
    %cst_11 = arith.constant dense<0xFF800000> : vector<2x8xf32>
    %21 = vector.multi_reduction <maximumf>, %20, %cst_11 [2] : vector<2x8x8xf32> to vector<2x8xf32>
    %22 = vector.shape_cast %21 : vector<2x8xf32> to vector<2x8x1xf32>
    %23 = vector.broadcast %22 : vector<2x8x1xf32> to vector<2x8x8xf32>
    %24 = arith.subf %20, %23 : vector<2x8x8xf32>
    %25 = math.exp %24 : vector<2x8x8xf32>
    %cst_12 = arith.constant dense<0.000000e+00> : vector<2x8xf32>
    %26 = vector.multi_reduction <add>, %25, %cst_12 [2] : vector<2x8x8xf32> to vector<2x8xf32>
    %27 = vector.shape_cast %26 : vector<2x8xf32> to vector<2x8x1xf32>
    %28 = tpu.reciprocal %27 {approx = true} : vector<2x8x1xf32> -> vector<2x8x1xf32>
    %29 = vector.broadcast %28 : vector<2x8x1xf32> to vector<2x8x8xf32>
    %30 = arith.mulf %25, %29 : vector<2x8x8xf32>
    %c0_13 = arith.constant 0 : index
    %c0_14 = arith.constant 0 : index
    %c0_15 = arith.constant 0 : index
    %c0_16 = arith.constant 0 : index
    %c0_17 = arith.constant 0 : index
    %31 = vector.load %arg15[%c0_13, %c0_14, %c0_15, %c0_16, %c0_17] : memref<2x4x2x8x8xf32, #tpu.memory_space<vmem>>, vector<1x1x2x8x8xf32>
    %32 = vector.shape_cast %31 : vector<1x1x2x8x8xf32> to vector<2x8x8xf32>
    %33 = vector.shape_cast %30 : vector<2x8x8xf32> to vector<1x1x2x8x8xf32>
    tpu.vector_store %arg15[%c0_13, %c0_14, %c0_15, %c0_16, %c0_17], %33 {strides = array<i32>} : memref<2x4x2x8x8xf32, #tpu.memory_space<vmem>>, vector<1x1x2x8x8xf32>,
    "tpu.trace_start"() <{level = 10 : i32, message = "bqk,bkd->bqd"}> : () -> ()
    %cst_18 = arith.constant dense<0.000000e+00> : vector<2x8x8xf32>
    %34 = tpu.matmul %30, %15, %cst_18 {dimension_numbers = #tpu.dot_dimension_numbers<[2], [1], [1], [2], [0, 0, 0, 1, 1, 2], [0], [0]>} : vector<2x8x8xf32>, vector<2x8x8xf32>, vector<2x8x8xf32> -> vector<2x8x8xf32>
    "tpu.trace_stop"() : () -> ()
    %35 = vector.shape_cast %34 : vector<2x8x8xf32> to vector<16x8xf32>
    %36 = vector.extract_strided_slice %9 {offsets = [0, 8], sizes = [16, 8], strides = [1, 1]} : vector<16x96xf32> to vector<16x8xf32>
    %37 = vector.shape_cast %36 : vector<16x8xf32> to vector<2x8x8xf32>
    %38 = vector.extract_strided_slice %9 {offsets = [0, 40], sizes = [16, 8], strides = [1, 1]} : vector<16x96xf32> to vector<16x8xf32>
    %39 = vector.shape_cast %38 : vector<16x8xf32> to vector<2x8x8xf32>
    %40 = vector.extract_strided_slice %9 {offsets = [0, 72], sizes = [16, 8], strides = [1, 1]} : vector<16x96xf32> to vector<16x8xf32>
    %41 = vector.shape_cast %40 : vector<16x8xf32> to vector<2x8x8xf32>
    "tpu.trace_start"() <{level = 10 : i32, message = "bqd,bkd->bqk"}> : () -> ()
    %cst_19 = arith.constant dense<0.000000e+00> : vector<2x8x8xf32>
    %42 = tpu.matmul %37, %39, %cst_19 {dimension_numbers = #tpu.dot_dimension_numbers<[2], [2], [1], [1], [0, 0, 0, 1, 1, 1], [0], [0]>} : vector<2x8x8xf32>, vector<2x8x8xf32>, vector<2x8x8xf32> -> vector<2x8x8xf32>
    "tpu.trace_stop"() : () -> ()
    %cst_20 = arith.constant 0.353553385 : f32
    %43 = vector.broadcast %cst_20 : f32 to vector<2x8x8xf32>
    %44 = arith.mulf %42, %43 : vector<2x8x8xf32>
    %45 = vector.broadcast %2 : vector<2x1x8xf32> to vector<2x8x8xf32>
    %46 = arith.addf %44, %45 : vector<2x8x8xf32>
    %cst_21 = arith.constant dense<0xFF800000> : vector<2x8xf32>
    %47 = vector.multi_reduction <maximumf>, %46, %cst_21 [2] : vector<2x8x8xf32> to vector<2x8xf32>
    %48 = vector.shape_cast %47 : vector<2x8xf32> to vector<2x8x1xf32>
    %49 = vector.broadcast %48 : vector<2x8x1xf32> to vector<2x8x8xf32>
    %50 = arith.subf %46, %49 : vector<2x8x8xf32>
    %51 = math.exp %50 : vector<2x8x8xf32>
    %cst_22 = arith.constant dense<0.000000e+00> : vector<2x8xf32>
    %52 = vector.multi_reduction <add>, %51, %cst_22 [2] : vector<2x8x8xf32> to vector<2x8xf32>
    %53 = vector.shape_cast %52 : vector<2x8xf32> to vector<2x8x1xf32>
    %54 = tpu.reciprocal %53 {approx = true} : vector<2x8x1xf32> -> vector<2x8x1xf32>
    %55 = vector.broadcast %54 : vector<2x8x1xf32> to vector<2x8x8xf32>
    %56 = arith.mulf %51, %55 : vector<2x8x8xf32>
    %c0_23 = arith.constant 0 : index
    %c1 = arith.constant 1 : index
    %c0_24 = arith.constant 0 : index
    %c0_25 = arith.constant 0 : index
    %c0_26 = arith.constant 0 : index
    %57 = vector.load %arg15[%c0_23, %c1, %c0_24, %c0_25, %c0_26] : memref<2x4x2x8x8xf32, #tpu.memory_space<vmem>>, vector<1x1x2x8x8xf32>
    %58 = vector.shape_cast %57 : vector<1x1x2x8x8xf32> to vector<2x8x8xf32>
    %59 = vector.shape_cast %56 : vector<2x8x8xf32> to vector<1x1x2x8x8xf32>
    tpu.vector_store %arg15[%c0_23, %c1, %c0_24, %c0_25, %c0_26], %59 {strides = array<i32>} : memref<2x4x2x8x8xf32, #tpu.memory_space<vmem>>, vector<1x1x2x8x8xf32>,
    "tpu.trace_start"() <{level = 10 : i32, message = "bqk,bkd->bqd"}> : () -> ()
    %cst_27 = arith.constant dense<0.000000e+00> : vector<2x8x8xf32>
    %60 = tpu.matmul %56, %41, %cst_27 {dimension_numbers = #tpu.dot_dimension_numbers<[2], [1], [1], [2], [0, 0, 0, 1, 1, 2], [0], [0]>} : vector<2x8x8xf32>, vector<2x8x8xf32>, vector<2x8x8xf32> -> vector<2x8x8xf32>
    "tpu.trace_stop"() : () -> ()
    %61 = vector.shape_cast %60 : vector<2x8x8xf32> to vector<16x8xf32>
    %62 = vector.extract_strided_slice %9 {offsets = [0, 16], sizes = [16, 8], strides = [1, 1]} : vector<16x96xf32> to vector<16x8xf32>
    %63 = vector.shape_cast %62 : vector<16x8xf32> to vector<2x8x8xf32>
    %64 = vector.extract_strided_slice %9 {offsets = [0, 48], sizes = [16, 8], strides = [1, 1]} : vector<16x96xf32> to vector<16x8xf32>
    %65 = vector.shape_cast %64 : vector<16x8xf32> to vector<2x8x8xf32>
    %66 = vector.extract_strided_slice %9 {offsets = [0, 80], sizes = [16, 8], strides = [1, 1]} : vector<16x96xf32> to vector<16x8xf32>
    %67 = vector.shape_cast %66 : vector<16x8xf32> to vector<2x8x8xf32>
    "tpu.trace_start"() <{level = 10 : i32, message = "bqd,bkd->bqk"}> : () -> ()
    %cst_28 = arith.constant dense<0.000000e+00> : vector<2x8x8xf32>
    %68 = tpu.matmul %63, %65, %cst_28 {dimension_numbers = #tpu.dot_dimension_numbers<[2], [2], [1], [1], [0, 0, 0, 1, 1, 1], [0], [0]>} : vector<2x8x8xf32>, vector<2x8x8xf32>, vector<2x8x8xf32> -> vector<2x8x8xf32>
    "tpu.trace_stop"() : () -> ()
    %cst_29 = arith.constant 0.353553385 : f32
    %69 = vector.broadcast %cst_29 : f32 to vector<2x8x8xf32>
    %70 = arith.mulf %68, %69 : vector<2x8x8xf32>
    %71 = vector.broadcast %2 : vector<2x1x8xf32> to vector<2x8x8xf32>
    %72 = arith.addf %70, %71 : vector<2x8x8xf32>
    %cst_30 = arith.constant dense<0xFF800000> : vector<2x8xf32>
    %73 = vector.multi_reduction <maximumf>, %72, %cst_30 [2] : vector<2x8x8xf32> to vector<2x8xf32>
    %74 = vector.shape_cast %73 : vector<2x8xf32> to vector<2x8x1xf32>
    %75 = vector.broadcast %74 : vector<2x8x1xf32> to vector<2x8x8xf32>
    %76 = arith.subf %72, %75 : vector<2x8x8xf32>
    %77 = math.exp %76 : vector<2x8x8xf32>
    %cst_31 = arith.constant dense<0.000000e+00> : vector<2x8xf32>
    %78 = vector.multi_reduction <add>, %77, %cst_31 [2] : vector<2x8x8xf32> to vector<2x8xf32>
    %79 = vector.shape_cast %78 : vector<2x8xf32> to vector<2x8x1xf32>
    %80 = tpu.reciprocal %79 {approx = true} : vector<2x8x1xf32> -> vector<2x8x1xf32>
    %81 = vector.broadcast %80 : vector<2x8x1xf32> to vector<2x8x8xf32>
    %82 = arith.mulf %77, %81 : vector<2x8x8xf32>
    %c0_32 = arith.constant 0 : index
    %c2 = arith.constant 2 : index
    %c0_33 = arith.constant 0 : index
    %c0_34 = arith.constant 0 : index
    %c0_35 = arith.constant 0 : index
    %83 = vector.load %arg15[%c0_32, %c2, %c0_33, %c0_34, %c0_35] : memref<2x4x2x8x8xf32, #tpu.memory_space<vmem>>, vector<1x1x2x8x8xf32>
    %84 = vector.shape_cast %83 : vector<1x1x2x8x8xf32> to vector<2x8x8xf32>
    %85 = vector.shape_cast %82 : vector<2x8x8xf32> to vector<1x1x2x8x8xf32>
    tpu.vector_store %arg15[%c0_32, %c2, %c0_33, %c0_34, %c0_35], %85 {strides = array<i32>} : memref<2x4x2x8x8xf32, #tpu.memory_space<vmem>>, vector<1x1x2x8x8xf32>,
    "tpu.trace_start"() <{level = 10 : i32, message = "bqk,bkd->bqd"}> : () -> ()
    %cst_36 = arith.constant dense<0.000000e+00> : vector<2x8x8xf32>
    %86 = tpu.matmul %82, %67, %cst_36 {dimension_numbers = #tpu.dot_dimension_numbers<[2], [1], [1], [2], [0, 0, 0, 1, 1, 2], [0], [0]>} : vector<2x8x8xf32>, vector<2x8x8xf32>, vector<2x8x8xf32> -> vector<2x8x8xf32>
    "tpu.trace_stop"() : () -> ()
    %87 = vector.shape_cast %86 : vector<2x8x8xf32> to vector<16x8xf32>
    %88 = vector.extract_strided_slice %9 {offsets = [0, 24], sizes = [16, 8], strides = [1, 1]} : vector<16x96xf32> to vector<16x8xf32>
    %89 = vector.shape_cast %88 : vector<16x8xf32> to vector<2x8x8xf32>
    %90 = vector.extract_strided_slice %9 {offsets = [0, 56], sizes = [16, 8], strides = [1, 1]} : vector<16x96xf32> to vector<16x8xf32>
    %91 = vector.shape_cast %90 : vector<16x8xf32> to vector<2x8x8xf32>
    %92 = vector.extract_strided_slice %9 {offsets = [0, 88], sizes = [16, 8], strides = [1, 1]} : vector<16x96xf32> to vector<16x8xf32>
    %93 = vector.shape_cast %92 : vector<16x8xf32> to vector<2x8x8xf32>
    "tpu.trace_start"() <{level = 10 : i32, message = "bqd,bkd->bqk"}> : () -> ()
    %cst_37 = arith.constant dense<0.000000e+00> : vector<2x8x8xf32>
    %94 = tpu.matmul %89, %91, %cst_37 {dimension_numbers = #tpu.dot_dimension_numbers<[2], [2], [1], [1], [0, 0, 0, 1, 1, 1], [0], [0]>} : vector<2x8x8xf32>, vector<2x8x8xf32>, vector<2x8x8xf32> -> vector<2x8x8xf32>
    "tpu.trace_stop"() : () -> ()
    %cst_38 = arith.constant 0.353553385 : f32
    %95 = vector.broadcast %cst_38 : f32 to vector<2x8x8xf32>
    %96 = arith.mulf %94, %95 : vector<2x8x8xf32>
    %97 = vector.broadcast %2 : vector<2x1x8xf32> to vector<2x8x8xf32>
    %98 = arith.addf %96, %97 : vector<2x8x8xf32>
    %cst_39 = arith.constant dense<0xFF800000> : vector<2x8xf32>
    %99 = vector.multi_reduction <maximumf>, %98, %cst_39 [2] : vector<2x8x8xf32> to vector<2x8xf32>
    %100 = vector.shape_cast %99 : vector<2x8xf32> to vector<2x8x1xf32>
    %101 = vector.broadcast %100 : vector<2x8x1xf32> to vector<2x8x8xf32>
    %102 = arith.subf %98, %101 : vector<2x8x8xf32>
    %103 = math.exp %102 : vector<2x8x8xf32>
    %cst_40 = arith.constant dense<0.000000e+00> : vector<2x8xf32>
    %104 = vector.multi_reduction <add>, %103, %cst_40 [2] : vector<2x8x8xf32> to vector<2x8xf32>
    %105 = vector.shape_cast %104 : vector<2x8xf32> to vector<2x8x1xf32>
    %106 = tpu.reciprocal %105 {approx = true} : vector<2x8x1xf32> -> vector<2x8x1xf32>
    %107 = vector.broadcast %106 : vector<2x8x1xf32> to vector<2x8x8xf32>
    %108 = arith.mulf %103, %107 : vector<2x8x8xf32>
    %c0_41 = arith.constant 0 : index
    %c3 = arith.constant 3 : index
    %c0_42 = arith.constant 0 : index
    %c0_43 = arith.constant 0 : index
    %c0_44 = arith.constant 0 : index
    %109 = vector.load %arg15[%c0_41, %c3, %c0_42, %c0_43, %c0_44] : memref<2x4x2x8x8xf32, #tpu.memory_space<vmem>>, vector<1x1x2x8x8xf32>
    %110 = vector.shape_cast %109 : vector<1x1x2x8x8xf32> to vector<2x8x8xf32>
    %111 = vector.shape_cast %108 : vector<2x8x8xf32> to vector<1x1x2x8x8xf32>
    tpu.vector_store %arg15[%c0_41, %c3, %c0_42, %c0_43, %c0_44], %111 {strides = array<i32>} : memref<2x4x2x8x8xf32, #tpu.memory_space<vmem>>, vector<1x1x2x8x8xf32>,
    "tpu.trace_start"() <{level = 10 : i32, message = "bqk,bkd->bqd"}> : () -> ()
    %cst_45 = arith.constant dense<0.000000e+00> : vector<2x8x8xf32>
    %112 = tpu.matmul %108, %93, %cst_45 {dimension_numbers = #tpu.dot_dimension_numbers<[2], [1], [1], [2], [0, 0, 0, 1, 1, 2], [0], [0]>} : vector<2x8x8xf32>, vector<2x8x8xf32>, vector<2x8x8xf32> -> vector<2x8x8xf32>
    "tpu.trace_stop"() : () -> ()
    %113 = vector.shape_cast %112 : vector<2x8x8xf32> to vector<16x8xf32>
    %114 = tpu.concatenate %35, %61, %87, %113 in 1 : vector<16x8xf32>, vector<16x8xf32>, vector<16x8xf32>, vector<16x8xf32> -> vector<16x32xf32>
    %c0_46 = arith.constant 0 : index
    %c0_47 = arith.constant 0 : index
    %c0_48 = arith.constant 0 : index
    %115 = vector.load %arg4[%c0_46, %c0_47, %c0_48] : memref<2x32x32xf32, #tpu.memory_space<vmem>>, vector<1x32x32xf32>
    %116 = vector.shape_cast %115 : vector<1x32x32xf32> to vector<32x32xf32>
    %cst_49 = arith.constant dense<0.000000e+00> : vector<16x32xf32>
    %117 = tpu.matmul %114, %116, %cst_49 {dimension_numbers = #tpu.dot_dimension_numbers<[1], [0], [0], [1], [0, 0, 1, 1], [], []>} : vector<16x32xf32>, vector<32x32xf32>, vector<16x32xf32> -> vector<16x32xf32>
    %c0_50 = arith.constant 0 : index
    %c0_51 = arith.constant 0 : index
    %c0_52 = arith.constant 0 : index
    %118 = vector.load %arg5[%c0_50, %c0_51, %c0_52] : memref<2x1x32xf32, #tpu.memory_space<vmem>>, vector<1x1x32xf32>
    %119 = vector.shape_cast %118 : vector<1x1x32xf32> to vector<1x32xf32>
    %120 = vector.broadcast %119 : vector<1x32xf32> to vector<16x32xf32>
    %121 = arith.addf %117, %120 : vector<16x32xf32>
    %122 = arith.addf %121, %0 : vector<16x32xf32>
    %c0_53 = arith.constant 0 : index
    %c0_54 = arith.constant 0 : index
    %c0_55 = arith.constant 0 : index
    %123 = vector.load %arg6[%c0_53, %c0_54, %c0_55] : memref<2x1x32xf32, #tpu.memory_space<vmem>>, vector<1x1x32xf32>
    %124 = vector.shape_cast %123 : vector<1x1x32xf32> to vector<1x32xf32>
    %c0_56 = arith.constant 0 : index
    %c0_57 = arith.constant 0 : index
    %c0_58 = arith.constant 0 : index
    %125 = vector.load %arg7[%c0_56, %c0_57, %c0_58] : memref<2x1x32xf32, #tpu.memory_space<vmem>>, vector<1x1x32xf32>
    %126 = vector.shape_cast %125 : vector<1x1x32xf32> to vector<1x32xf32>
    %cst_59 = arith.constant dense<0.000000e+00> : vector<16xf32>
    %127 = vector.multi_reduction <add>, %122, %cst_59 [1] : vector<16x32xf32> to vector<16xf32>
    %128 = vector.shape_cast %127 : vector<16xf32> to vector<16x1xf32>
    %cst_60 = arith.constant 3.200000e+01 : f32
    %129 = vector.broadcast %cst_60 : f32 to vector<16x1xf32>
    %130 = arith.divf %128, %129 : vector<16x1xf32>
    %131 = vector.broadcast %130 : vector<16x1xf32> to vector<16x32xf32>
    %132 = arith.subf %122, %131 : vector<16x32xf32>
    %133 = arith.mulf %132, %132 : vector<16x32xf32>
    %cst_61 = arith.constant dense<0.000000e+00> : vector<16xf32>
    %134 = vector.multi_reduction <add>, %133, %cst_61 [1] : vector<16x32xf32> to vector<16xf32>
    %135 = vector.shape_cast %134 : vector<16xf32> to vector<16x1xf32>
    %cst_62 = arith.constant 3.200000e+01 : f32
    %136 = vector.broadcast %cst_62 : f32 to vector<16x1xf32>
    %137 = arith.divf %135, %136 : vector<16x1xf32>
    %138 = vector.broadcast %130 : vector<16x1xf32> to vector<16x32xf32>
    %139 = arith.subf %122, %138 : vector<16x32xf32>
    %cst_63 = arith.constant 9.99999974E-6 : f32
    %140 = vector.broadcast %cst_63 : f32 to vector<16x1xf32>
    %141 = arith.addf %137, %140 : vector<16x1xf32>
    %142 = math.rsqrt %141 : vector<16x1xf32>
    %143 = vector.broadcast %142 : vector<16x1xf32> to vector<16x32xf32>
    %144 = arith.mulf %139, %143 : vector<16x32xf32>
    %145 = vector.broadcast %124 : vector<1x32xf32> to vector<16x32xf32>
    %146 = arith.mulf %144, %145 : vector<16x32xf32>
    %147 = vector.broadcast %126 : vector<1x32xf32> to vector<16x32xf32>
    %148 = arith.addf %146, %147 : vector<16x32xf32>
    %c0_64 = arith.constant 0 : index
    %c0_65 = arith.constant 0 : index
    %c0_66 = arith.constant 0 : index
    %149 = vector.load %arg8[%c0_64, %c0_65, %c0_66] : memref<2x32x64xf32, #tpu.memory_space<vmem>>, vector<1x32x64xf32>
    %150 = vector.shape_cast %149 : vector<1x32x64xf32> to vector<32x64xf32>
    %cst_67 = arith.constant dense<0.000000e+00> : vector<16x64xf32>
    %151 = tpu.matmul %148, %150, %cst_67 {dimension_numbers = #tpu.dot_dimension_numbers<[1], [0], [0], [1], [0, 0, 1, 1], [], []>} : vector<16x32xf32>, vector<32x64xf32>, vector<16x64xf32> -> vector<16x64xf32>
    %c0_68 = arith.constant 0 : index
    %c0_69 = arith.constant 0 : index
    %c0_70 = arith.constant 0 : index
    %152 = vector.load %arg9[%c0_68, %c0_69, %c0_70] : memref<2x1x64xf32, #tpu.memory_space<vmem>>, vector<1x1x64xf32>
    %153 = vector.shape_cast %152 : vector<1x1x64xf32> to vector<1x64xf32>
    %154 = vector.broadcast %153 : vector<1x64xf32> to vector<16x64xf32>
    %155 = arith.addf %151, %154 : vector<16x64xf32>
    %cst_71 = arith.constant 0.000000e+00 : f32
    %156 = vector.broadcast %cst_71 : f32 to vector<16x64xf32>
    %157 = arith.maximumf %155, %156 : vector<16x64xf32>
    %c0_72 = arith.constant 0 : index
    %c0_73 = arith.constant 0 : index
    %c0_74 = arith.constant 0 : index
    %158 = vector.load %arg10[%c0_72, %c0_73, %c0_74] : memref<2x64x32xf32, #tpu.memory_space<vmem>>, vector<1x64x32xf32>
    %159 = vector.shape_cast %158 : vector<1x64x32xf32> to vector<64x32xf32>
    %cst_75 = arith.constant dense<0.000000e+00> : vector<16x32xf32>
    %160 = tpu.matmul %157, %159, %cst_75 {dimension_numbers = #tpu.dot_dimension_numbers<[1], [0], [0], [1], [0, 0, 1, 1], [], []>} : vector<16x64xf32>, vector<64x32xf32>, vector<16x32xf32> -> vector<16x32xf32>
    %c0_76 = arith.constant 0 : index
    %c0_77 = arith.constant 0 : index
    %c0_78 = arith.constant 0 : index
    %161 = vector.load %arg11[%c0_76, %c0_77, %c0_78] : memref<2x1x32xf32, #tpu.memory_space<vmem>>, vector<1x1x32xf32>
    %162 = vector.shape_cast %161 : vector<1x1x32xf32> to vector<1x32xf32>
    %163 = vector.broadcast %162 : vector<1x32xf32> to vector<16x32xf32>
    %164 = arith.addf %160, %163 : vector<16x32xf32>
    %165 = arith.addf %148, %164 : vector<16x32xf32>
    %c0_79 = arith.constant 0 : index
    %c0_80 = arith.constant 0 : index
    %c0_81 = arith.constant 0 : index
    %166 = vector.load %arg12[%c0_79, %c0_80, %c0_81] : memref<2x1x32xf32, #tpu.memory_space<vmem>>, vector<1x1x32xf32>
    %167 = vector.shape_cast %166 : vector<1x1x32xf32> to vector<1x32xf32>
    %c0_82 = arith.constant 0 : index
    %c0_83 = arith.constant 0 : index
    %c0_84 = arith.constant 0 : index
    %168 = vector.load %arg13[%c0_82, %c0_83, %c0_84] : memref<2x1x32xf32, #tpu.memory_space<vmem>>, vector<1x1x32xf32>
    %169 = vector.shape_cast %168 : vector<1x1x32xf32> to vector<1x32xf32>
    %cst_85 = arith.constant dense<0.000000e+00> : vector<16xf32>
    %170 = vector.multi_reduction <add>, %165, %cst_85 [1] : vector<16x32xf32> to vector<16xf32>
    %171 = vector.shape_cast %170 : vector<16xf32> to vector<16x1xf32>
    %cst_86 = arith.constant 3.200000e+01 : f32
    %172 = vector.broadcast %cst_86 : f32 to vector<16x1xf32>
    %173 = arith.divf %171, %172 : vector<16x1xf32>
    %174 = vector.broadcast %173 : vector<16x1xf32> to vector<16x32xf32>
    %175 = arith.subf %165, %174 : vector<16x32xf32>
    %176 = arith.mulf %175, %175 : vector<16x32xf32>
    %cst_87 = arith.constant dense<0.000000e+00> : vector<16xf32>
    %177 = vector.multi_reduction <add>, %176, %cst_87 [1] : vector<16x32xf32> to vector<16xf32>
    %178 = vector.shape_cast %177 : vector<16xf32> to vector<16x1xf32>
    %cst_88 = arith.constant 3.200000e+01 : f32
    %179 = vector.broadcast %cst_88 : f32 to vector<16x1xf32>
    %180 = arith.divf %178, %179 : vector<16x1xf32>
    %181 = vector.broadcast %173 : vector<16x1xf32> to vector<16x32xf32>
    %182 = arith.subf %165, %181 : vector<16x32xf32>
    %cst_89 = arith.constant 9.99999974E-6 : f32
    %183 = vector.broadcast %cst_89 : f32 to vector<16x1xf32>
    %184 = arith.addf %180, %183 : vector<16x1xf32>
    %185 = math.rsqrt %184 : vector<16x1xf32>
    %186 = vector.broadcast %185 : vector<16x1xf32> to vector<16x32xf32>
    %187 = arith.mulf %182, %186 : vector<16x32xf32>
    %188 = vector.broadcast %167 : vector<1x32xf32> to vector<16x32xf32>
    %189 = arith.mulf %187, %188 : vector<16x32xf32>
    %190 = vector.broadcast %169 : vector<1x32xf32> to vector<16x32xf32>
    %191 = arith.addf %189, %190 : vector<16x32xf32>
    %c0_90 = arith.constant 0 : index
    %c0_91 = arith.constant 0 : index
    %c0_92 = arith.constant 0 : index
    %192 = vector.load %arg14[%c0_90, %c0_91, %c0_92] : memref<2x16x32xf32, #tpu.memory_space<vmem>>, vector<1x16x32xf32>
    %193 = vector.shape_cast %192 : vector<1x16x32xf32> to vector<16x32xf32>
    %194 = vector.shape_cast %191 : vector<16x32xf32> to vector<1x16x32xf32>
    tpu.vector_store %arg14[%c0_90, %c0_91, %c0_92], %194 {strides = array<i32>} : memref<2x16x32xf32, #tpu.memory_space<vmem>>, vector<1x16x32xf32>,
    %c1_93 = arith.constant 1 : index
    %c0_94 = arith.constant 0 : index
    %c0_95 = arith.constant 0 : index
    %195 = vector.load %arg2[%c1_93, %c0_94, %c0_95] : memref<2x32x96xf32, #tpu.memory_space<vmem>>, vector<1x32x96xf32>
    %196 = vector.shape_cast %195 : vector<1x32x96xf32> to vector<32x96xf32>
    %cst_96 = arith.constant dense<0.000000e+00> : vector<16x96xf32>
    %197 = tpu.matmul %191, %196, %cst_96 {dimension_numbers = #tpu.dot_dimension_numbers<[1], [0], [0], [1], [0, 0, 1, 1], [], []>} : vector<16x32xf32>, vector<32x96xf32>, vector<16x96xf32> -> vector<16x96xf32>
    %c1_97 = arith.constant 1 : index
    %c0_98 = arith.constant 0 : index
    %c0_99 = arith.constant 0 : index
    %198 = vector.load %arg3[%c1_97, %c0_98, %c0_99] : memref<2x1x96xf32, #tpu.memory_space<vmem>>, vector<1x1x96xf32>
    %199 = vector.shape_cast %198 : vector<1x1x96xf32> to vector<1x96xf32>
    %200 = vector.broadcast %199 : vector<1x96xf32> to vector<16x96xf32>
    %201 = arith.addf %197, %200 : vector<16x96xf32>
    %202 = vector.extract_strided_slice %201 {offsets = [0, 0], sizes = [16, 8], strides = [1, 1]} : vector<16x96xf32> to vector<16x8xf32>
    %203 = vector.shape_cast %202 : vector<16x8xf32> to vector<2x8x8xf32>
    %204 = vector.extract_strided_slice %201 {offsets = [0, 32], sizes = [16, 8], strides = [1, 1]} : vector<16x96xf32> to vector<16x8xf32>
    %205 = vector.shape_cast %204 : vector<16x8xf32> to vector<2x8x8xf32>
    %206 = vector.extract_strided_slice %201 {offsets = [0, 64], sizes = [16, 8], strides = [1, 1]} : vector<16x96xf32> to vector<16x8xf32>
    %207 = vector.shape_cast %206 : vector<16x8xf32> to vector<2x8x8xf32>
    "tpu.trace_start"() <{level = 10 : i32, message = "bqd,bkd->bqk"}> : () -> ()
    %cst_100 = arith.constant dense<0.000000e+00> : vector<2x8x8xf32>
    %208 = tpu.matmul %203, %205, %cst_100 {dimension_numbers = #tpu.dot_dimension_numbers<[2], [2], [1], [1], [0, 0, 0, 1, 1, 1], [0], [0]>} : vector<2x8x8xf32>, vector<2x8x8xf32>, vector<2x8x8xf32> -> vector<2x8x8xf32>
    "tpu.trace_stop"() : () -> ()
    %cst_101 = arith.constant 0.353553385 : f32
    %209 = vector.broadcast %cst_101 : f32 to vector<2x8x8xf32>
    %210 = arith.mulf %208, %209 : vector<2x8x8xf32>
    %211 = vector.broadcast %2 : vector<2x1x8xf32> to vector<2x8x8xf32>
    %212 = arith.addf %210, %211 : vector<2x8x8xf32>
    %cst_102 = arith.constant dense<0xFF800000> : vector<2x8xf32>
    %213 = vector.multi_reduction <maximumf>, %212, %cst_102 [2] : vector<2x8x8xf32> to vector<2x8xf32>
    %214 = vector.shape_cast %213 : vector<2x8xf32> to vector<2x8x1xf32>
    %215 = vector.broadcast %214 : vector<2x8x1xf32> to vector<2x8x8xf32>
    %216 = arith.subf %212, %215 : vector<2x8x8xf32>
    %217 = math.exp %216 : vector<2x8x8xf32>
    %cst_103 = arith.constant dense<0.000000e+00> : vector<2x8xf32>
    %218 = vector.multi_reduction <add>, %217, %cst_103 [2] : vector<2x8x8xf32> to vector<2x8xf32>
    %219 = vector.shape_cast %218 : vector<2x8xf32> to vector<2x8x1xf32>
    %220 = tpu.reciprocal %219 {approx = true} : vector<2x8x1xf32> -> vector<2x8x1xf32>
    %221 = vector.broadcast %220 : vector<2x8x1xf32> to vector<2x8x8xf32>
    %222 = arith.mulf %217, %221 : vector<2x8x8xf32>
    %c1_104 = arith.constant 1 : index
    %c0_105 = arith.constant 0 : index
    %c0_106 = arith.constant 0 : index
    %c0_107 = arith.constant 0 : index
    %c0_108 = arith.constant 0 : index
    %223 = vector.load %arg15[%c1_104, %c0_105, %c0_106, %c0_107, %c0_108] : memref<2x4x2x8x8xf32, #tpu.memory_space<vmem>>, vector<1x1x2x8x8xf32>
    %224 = vector.shape_cast %223 : vector<1x1x2x8x8xf32> to vector<2x8x8xf32>
    %225 = vector.shape_cast %222 : vector<2x8x8xf32> to vector<1x1x2x8x8xf32>
    tpu.vector_store %arg15[%c1_104, %c0_105, %c0_106, %c0_107, %c0_108], %225 {strides = array<i32>} : memref<2x4x2x8x8xf32, #tpu.memory_space<vmem>>, vector<1x1x2x8x8xf32>,
    "tpu.trace_start"() <{level = 10 : i32, message = "bqk,bkd->bqd"}> : () -> ()
    %cst_109 = arith.constant dense<0.000000e+00> : vector<2x8x8xf32>
    %226 = tpu.matmul %222, %207, %cst_109 {dimension_numbers = #tpu.dot_dimension_numbers<[2], [1], [1], [2], [0, 0, 0, 1, 1, 2], [0], [0]>} : vector<2x8x8xf32>, vector<2x8x8xf32>, vector<2x8x8xf32> -> vector<2x8x8xf32>
    "tpu.trace_stop"() : () -> ()
    %227 = vector.shape_cast %226 : vector<2x8x8xf32> to vector<16x8xf32>
    %228 = vector.extract_strided_slice %201 {offsets = [0, 8], sizes = [16, 8], strides = [1, 1]} : vector<16x96xf32> to vector<16x8xf32>
    %229 = vector.shape_cast %228 : vector<16x8xf32> to vector<2x8x8xf32>
    %230 = vector.extract_strided_slice %201 {offsets = [0, 40], sizes = [16, 8], strides = [1, 1]} : vector<16x96xf32> to vector<16x8xf32>
    %231 = vector.shape_cast %230 : vector<16x8xf32> to vector<2x8x8xf32>
    %232 = vector.extract_strided_slice %201 {offsets = [0, 72], sizes = [16, 8], strides = [1, 1]} : vector<16x96xf32> to vector<16x8xf32>
    %233 = vector.shape_cast %232 : vector<16x8xf32> to vector<2x8x8xf32>
    "tpu.trace_start"() <{level = 10 : i32, message = "bqd,bkd->bqk"}> : () -> ()
    %cst_110 = arith.constant dense<0.000000e+00> : vector<2x8x8xf32>
    %234 = tpu.matmul %229, %231, %cst_110 {dimension_numbers = #tpu.dot_dimension_numbers<[2], [2], [1], [1], [0, 0, 0, 1, 1, 1], [0], [0]>} : vector<2x8x8xf32>, vector<2x8x8xf32>, vector<2x8x8xf32> -> vector<2x8x8xf32>
    "tpu.trace_stop"() : () -> ()
    %cst_111 = arith.constant 0.353553385 : f32
    %235 = vector.broadcast %cst_111 : f32 to vector<2x8x8xf32>
    %236 = arith.mulf %234, %235 : vector<2x8x8xf32>
    %237 = vector.broadcast %2 : vector<2x1x8xf32> to vector<2x8x8xf32>
    %238 = arith.addf %236, %237 : vector<2x8x8xf32>
    %cst_112 = arith.constant dense<0xFF800000> : vector<2x8xf32>
    %239 = vector.multi_reduction <maximumf>, %238, %cst_112 [2] : vector<2x8x8xf32> to vector<2x8xf32>
    %240 = vector.shape_cast %239 : vector<2x8xf32> to vector<2x8x1xf32>
    %241 = vector.broadcast %240 : vector<2x8x1xf32> to vector<2x8x8xf32>
    %242 = arith.subf %238, %241 : vector<2x8x8xf32>
    %243 = math.exp %242 : vector<2x8x8xf32>
    %cst_113 = arith.constant dense<0.000000e+00> : vector<2x8xf32>
    %244 = vector.multi_reduction <add>, %243, %cst_113 [2] : vector<2x8x8xf32> to vector<2x8xf32>
    %245 = vector.shape_cast %244 : vector<2x8xf32> to vector<2x8x1xf32>
    %246 = tpu.reciprocal %245 {approx = true} : vector<2x8x1xf32> -> vector<2x8x1xf32>
    %247 = vector.broadcast %246 : vector<2x8x1xf32> to vector<2x8x8xf32>
    %248 = arith.mulf %243, %247 : vector<2x8x8xf32>
    %c1_114 = arith.constant 1 : index
    %c1_115 = arith.constant 1 : index
    %c0_116 = arith.constant 0 : index
    %c0_117 = arith.constant 0 : index
    %c0_118 = arith.constant 0 : index
    %249 = vector.load %arg15[%c1_114, %c1_115, %c0_116, %c0_117, %c0_118] : memref<2x4x2x8x8xf32, #tpu.memory_space<vmem>>, vector<1x1x2x8x8xf32>
    %250 = vector.shape_cast %249 : vector<1x1x2x8x8xf32> to vector<2x8x8xf32>
    %251 = vector.shape_cast %248 : vector<2x8x8xf32> to vector<1x1x2x8x8xf32>
    tpu.vector_store %arg15[%c1_114, %c1_115, %c0_116, %c0_117, %c0_118], %251 {strides = array<i32>} : memref<2x4x2x8x8xf32, #tpu.memory_space<vmem>>, vector<1x1x2x8x8xf32>,
    "tpu.trace_start"() <{level = 10 : i32, message = "bqk,bkd->bqd"}> : () -> ()
    %cst_119 = arith.constant dense<0.000000e+00> : vector<2x8x8xf32>
    %252 = tpu.matmul %248, %233, %cst_119 {dimension_numbers = #tpu.dot_dimension_numbers<[2], [1], [1], [2], [0, 0, 0, 1, 1, 2], [0], [0]>} : vector<2x8x8xf32>, vector<2x8x8xf32>, vector<2x8x8xf32> -> vector<2x8x8xf32>
    "tpu.trace_stop"() : () -> ()
    %253 = vector.shape_cast %252 : vector<2x8x8xf32> to vector<16x8xf32>
    %254 = vector.extract_strided_slice %201 {offsets = [0, 16], sizes = [16, 8], strides = [1, 1]} : vector<16x96xf32> to vector<16x8xf32>
    %255 = vector.shape_cast %254 : vector<16x8xf32> to vector<2x8x8xf32>
    %256 = vector.extract_strided_slice %201 {offsets = [0, 48], sizes = [16, 8], strides = [1, 1]} : vector<16x96xf32> to vector<16x8xf32>
    %257 = vector.shape_cast %256 : vector<16x8xf32> to vector<2x8x8xf32>
    %258 = vector.extract_strided_slice %201 {offsets = [0, 80], sizes = [16, 8], strides = [1, 1]} : vector<16x96xf32> to vector<16x8xf32>
    %259 = vector.shape_cast %258 : vector<16x8xf32> to vector<2x8x8xf32>
    "tpu.trace_start"() <{level = 10 : i32, message = "bqd,bkd->bqk"}> : () -> ()
    %cst_120 = arith.constant dense<0.000000e+00> : vector<2x8x8xf32>
    %260 = tpu.matmul %255, %257, %cst_120 {dimension_numbers = #tpu.dot_dimension_numbers<[2], [2], [1], [1], [0, 0, 0, 1, 1, 1], [0], [0]>} : vector<2x8x8xf32>, vector<2x8x8xf32>, vector<2x8x8xf32> -> vector<2x8x8xf32>
    "tpu.trace_stop"() : () -> ()
    %cst_121 = arith.constant 0.353553385 : f32
    %261 = vector.broadcast %cst_121 : f32 to vector<2x8x8xf32>
    %262 = arith.mulf %260, %261 : vector<2x8x8xf32>
    %263 = vector.broadcast %2 : vector<2x1x8xf32> to vector<2x8x8xf32>
    %264 = arith.addf %262, %263 : vector<2x8x8xf32>
    %cst_122 = arith.constant dense<0xFF800000> : vector<2x8xf32>
    %265 = vector.multi_reduction <maximumf>, %264, %cst_122 [2] : vector<2x8x8xf32> to vector<2x8xf32>
    %266 = vector.shape_cast %265 : vector<2x8xf32> to vector<2x8x1xf32>
    %267 = vector.broadcast %266 : vector<2x8x1xf32> to vector<2x8x8xf32>
    %268 = arith.subf %264, %267 : vector<2x8x8xf32>
    %269 = math.exp %268 : vector<2x8x8xf32>
    %cst_123 = arith.constant dense<0.000000e+00> : vector<2x8xf32>
    %270 = vector.multi_reduction <add>, %269, %cst_123 [2] : vector<2x8x8xf32> to vector<2x8xf32>
    %271 = vector.shape_cast %270 : vector<2x8xf32> to vector<2x8x1xf32>
    %272 = tpu.reciprocal %271 {approx = true} : vector<2x8x1xf32> -> vector<2x8x1xf32>
    %273 = vector.broadcast %272 : vector<2x8x1xf32> to vector<2x8x8xf32>
    %274 = arith.mulf %269, %273 : vector<2x8x8xf32>
    %c1_124 = arith.constant 1 : index
    %c2_125 = arith.constant 2 : index
    %c0_126 = arith.constant 0 : index
    %c0_127 = arith.constant 0 : index
    %c0_128 = arith.constant 0 : index
    %275 = vector.load %arg15[%c1_124, %c2_125, %c0_126, %c0_127, %c0_128] : memref<2x4x2x8x8xf32, #tpu.memory_space<vmem>>, vector<1x1x2x8x8xf32>
    %276 = vector.shape_cast %275 : vector<1x1x2x8x8xf32> to vector<2x8x8xf32>
    %277 = vector.shape_cast %274 : vector<2x8x8xf32> to vector<1x1x2x8x8xf32>
    tpu.vector_store %arg15[%c1_124, %c2_125, %c0_126, %c0_127, %c0_128], %277 {strides = array<i32>} : memref<2x4x2x8x8xf32, #tpu.memory_space<vmem>>, vector<1x1x2x8x8xf32>,
    "tpu.trace_start"() <{level = 10 : i32, message = "bqk,bkd->bqd"}> : () -> ()
    %cst_129 = arith.constant dense<0.000000e+00> : vector<2x8x8xf32>
    %278 = tpu.matmul %274, %259, %cst_129 {dimension_numbers = #tpu.dot_dimension_numbers<[2], [1], [1], [2], [0, 0, 0, 1, 1, 2], [0], [0]>} : vector<2x8x8xf32>, vector<2x8x8xf32>, vector<2x8x8xf32> -> vector<2x8x8xf32>
    "tpu.trace_stop"() : () -> ()
    %279 = vector.shape_cast %278 : vector<2x8x8xf32> to vector<16x8xf32>
    %280 = vector.extract_strided_slice %201 {offsets = [0, 24], sizes = [16, 8], strides = [1, 1]} : vector<16x96xf32> to vector<16x8xf32>
    %281 = vector.shape_cast %280 : vector<16x8xf32> to vector<2x8x8xf32>
    %282 = vector.extract_strided_slice %201 {offsets = [0, 56], sizes = [16, 8], strides = [1, 1]} : vector<16x96xf32> to vector<16x8xf32>
    %283 = vector.shape_cast %282 : vector<16x8xf32> to vector<2x8x8xf32>
    %284 = vector.extract_strided_slice %201 {offsets = [0, 88], sizes = [16, 8], strides = [1, 1]} : vector<16x96xf32> to vector<16x8xf32>
    %285 = vector.shape_cast %284 : vector<16x8xf32> to vector<2x8x8xf32>
    "tpu.trace_start"() <{level = 10 : i32, message = "bqd,bkd->bqk"}> : () -> ()
    %cst_130 = arith.constant dense<0.000000e+00> : vector<2x8x8xf32>
    %286 = tpu.matmul %281, %283, %cst_130 {dimension_numbers = #tpu.dot_dimension_numbers<[2], [2], [1], [1], [0, 0, 0, 1, 1, 1], [0], [0]>} : vector<2x8x8xf32>, vector<2x8x8xf32>, vector<2x8x8xf32> -> vector<2x8x8xf32>
    "tpu.trace_stop"() : () -> ()
    %cst_131 = arith.constant 0.353553385 : f32
    %287 = vector.broadcast %cst_131 : f32 to vector<2x8x8xf32>
    %288 = arith.mulf %286, %287 : vector<2x8x8xf32>
    %289 = vector.broadcast %2 : vector<2x1x8xf32> to vector<2x8x8xf32>
    %290 = arith.addf %288, %289 : vector<2x8x8xf32>
    %cst_132 = arith.constant dense<0xFF800000> : vector<2x8xf32>
    %291 = vector.multi_reduction <maximumf>, %290, %cst_132 [2] : vector<2x8x8xf32> to vector<2x8xf32>
    %292 = vector.shape_cast %291 : vector<2x8xf32> to vector<2x8x1xf32>
    %293 = vector.broadcast %292 : vector<2x8x1xf32> to vector<2x8x8xf32>
    %294 = arith.subf %290, %293 : vector<2x8x8xf32>
    %295 = math.exp %294 : vector<2x8x8xf32>
    %cst_133 = arith.constant dense<0.000000e+00> : vector<2x8xf32>
    %296 = vector.multi_reduction <add>, %295, %cst_133 [2] : vector<2x8x8xf32> to vector<2x8xf32>
    %297 = vector.shape_cast %296 : vector<2x8xf32> to vector<2x8x1xf32>
    %298 = tpu.reciprocal %297 {approx = true} : vector<2x8x1xf32> -> vector<2x8x1xf32>
    %299 = vector.broadcast %298 : vector<2x8x1xf32> to vector<2x8x8xf32>
    %300 = arith.mulf %295, %299 : vector<2x8x8xf32>
    %c1_134 = arith.constant 1 : index
    %c3_135 = arith.constant 3 : index
    %c0_136 = arith.constant 0 : index
    %c0_137 = arith.constant 0 : index
    %c0_138 = arith.constant 0 : index
    %301 = vector.load %arg15[%c1_134, %c3_135, %c0_136, %c0_137, %c0_138] : memref<2x4x2x8x8xf32, #tpu.memory_space<vmem>>, vector<1x1x2x8x8xf32>
    %302 = vector.shape_cast %301 : vector<1x1x2x8x8xf32> to vector<2x8x8xf32>
    %303 = vector.shape_cast %300 : vector<2x8x8xf32> to vector<1x1x2x8x8xf32>
    tpu.vector_store %arg15[%c1_134, %c3_135, %c0_136, %c0_137, %c0_138], %303 {strides = array<i32>} : memref<2x4x2x8x8xf32, #tpu.memory_space<vmem>>, vector<1x1x2x8x8xf32>,
    "tpu.trace_start"() <{level = 10 : i32, message = "bqk,bkd->bqd"}> : () -> ()
    %cst_139 = arith.constant dense<0.000000e+00> : vector<2x8x8xf32>
    %304 = tpu.matmul %300, %285, %cst_139 {dimension_numbers = #tpu.dot_dimension_numbers<[2], [1], [1], [2], [0, 0, 0, 1, 1, 2], [0], [0]>} : vector<2x8x8xf32>, vector<2x8x8xf32>, vector<2x8x8xf32> -> vector<2x8x8xf32>
    "tpu.trace_stop"() : () -> ()
    %305 = vector.shape_cast %304 : vector<2x8x8xf32> to vector<16x8xf32>
    %306 = tpu.concatenate %227, %253, %279, %305 in 1 : vector<16x8xf32>, vector<16x8xf32>, vector<16x8xf32>, vector<16x8xf32> -> vector<16x32xf32>
    %c1_140 = arith.constant 1 : index
    %c0_141 = arith.constant 0 : index
    %c0_142 = arith.constant 0 : index
    %307 = vector.load %arg4[%c1_140, %c0_141, %c0_142] : memref<2x32x32xf32, #tpu.memory_space<vmem>>, vector<1x32x32xf32>
    %308 = vector.shape_cast %307 : vector<1x32x32xf32> to vector<32x32xf32>
    %cst_143 = arith.constant dense<0.000000e+00> : vector<16x32xf32>
    %309 = tpu.matmul %306, %308, %cst_143 {dimension_numbers = #tpu.dot_dimension_numbers<[1], [0], [0], [1], [0, 0, 1, 1], [], []>} : vector<16x32xf32>, vector<32x32xf32>, vector<16x32xf32> -> vector<16x32xf32>
    %c1_144 = arith.constant 1 : index
    %c0_145 = arith.constant 0 : index
    %c0_146 = arith.constant 0 : index
    %310 = vector.load %arg5[%c1_144, %c0_145, %c0_146] : memref<2x1x32xf32, #tpu.memory_space<vmem>>, vector<1x1x32xf32>
    %311 = vector.shape_cast %310 : vector<1x1x32xf32> to vector<1x32xf32>
    %312 = vector.broadcast %311 : vector<1x32xf32> to vector<16x32xf32>
    %313 = arith.addf %309, %312 : vector<16x32xf32>
    %314 = arith.addf %313, %191 : vector<16x32xf32>
    %c1_147 = arith.constant 1 : index
    %c0_148 = arith.constant 0 : index
    %c0_149 = arith.constant 0 : index
    %315 = vector.load %arg6[%c1_147, %c0_148, %c0_149] : memref<2x1x32xf32, #tpu.memory_space<vmem>>, vector<1x1x32xf32>
    %316 = vector.shape_cast %315 : vector<1x1x32xf32> to vector<1x32xf32>
    %c1_150 = arith.constant 1 : index
    %c0_151 = arith.constant 0 : index
    %c0_152 = arith.constant 0 : index
    %317 = vector.load %arg7[%c1_150, %c0_151, %c0_152] : memref<2x1x32xf32, #tpu.memory_space<vmem>>, vector<1x1x32xf32>
    %318 = vector.shape_cast %317 : vector<1x1x32xf32> to vector<1x32xf32>
    %cst_153 = arith.constant dense<0.000000e+00> : vector<16xf32>
    %319 = vector.multi_reduction <add>, %314, %cst_153 [1] : vector<16x32xf32> to vector<16xf32>
    %320 = vector.shape_cast %319 : vector<16xf32> to vector<16x1xf32>
    %cst_154 = arith.constant 3.200000e+01 : f32
    %321 = vector.broadcast %cst_154 : f32 to vector<16x1xf32>
    %322 = arith.divf %320, %321 : vector<16x1xf32>
    %323 = vector.broadcast %322 : vector<16x1xf32> to vector<16x32xf32>
    %324 = arith.subf %314, %323 : vector<16x32xf32>
    %325 = arith.mulf %324, %324 : vector<16x32xf32>
    %cst_155 = arith.constant dense<0.000000e+00> : vector<16xf32>
    %326 = vector.multi_reduction <add>, %325, %cst_155 [1] : vector<16x32xf32> to vector<16xf32>
    %327 = vector.shape_cast %326 : vector<16xf32> to vector<16x1xf32>
    %cst_156 = arith.constant 3.200000e+01 : f32
    %328 = vector.broadcast %cst_156 : f32 to vector<16x1xf32>
    %329 = arith.divf %327, %328 : vector<16x1xf32>
    %330 = vector.broadcast %322 : vector<16x1xf32> to vector<16x32xf32>
    %331 = arith.subf %314, %330 : vector<16x32xf32>
    %cst_157 = arith.constant 9.99999974E-6 : f32
    %332 = vector.broadcast %cst_157 : f32 to vector<16x1xf32>
    %333 = arith.addf %329, %332 : vector<16x1xf32>
    %334 = math.rsqrt %333 : vector<16x1xf32>
    %335 = vector.broadcast %334 : vector<16x1xf32> to vector<16x32xf32>
    %336 = arith.mulf %331, %335 : vector<16x32xf32>
    %337 = vector.broadcast %316 : vector<1x32xf32> to vector<16x32xf32>
    %338 = arith.mulf %336, %337 : vector<16x32xf32>
    %339 = vector.broadcast %318 : vector<1x32xf32> to vector<16x32xf32>
    %340 = arith.addf %338, %339 : vector<16x32xf32>
    %c1_158 = arith.constant 1 : index
    %c0_159 = arith.constant 0 : index
    %c0_160 = arith.constant 0 : index
    %341 = vector.load %arg8[%c1_158, %c0_159, %c0_160] : memref<2x32x64xf32, #tpu.memory_space<vmem>>, vector<1x32x64xf32>
    %342 = vector.shape_cast %341 : vector<1x32x64xf32> to vector<32x64xf32>
    %cst_161 = arith.constant dense<0.000000e+00> : vector<16x64xf32>
    %343 = tpu.matmul %340, %342, %cst_161 {dimension_numbers = #tpu.dot_dimension_numbers<[1], [0], [0], [1], [0, 0, 1, 1], [], []>} : vector<16x32xf32>, vector<32x64xf32>, vector<16x64xf32> -> vector<16x64xf32>
    %c1_162 = arith.constant 1 : index
    %c0_163 = arith.constant 0 : index
    %c0_164 = arith.constant 0 : index
    %344 = vector.load %arg9[%c1_162, %c0_163, %c0_164] : memref<2x1x64xf32, #tpu.memory_space<vmem>>, vector<1x1x64xf32>
    %345 = vector.shape_cast %344 : vector<1x1x64xf32> to vector<1x64xf32>
    %346 = vector.broadcast %345 : vector<1x64xf32> to vector<16x64xf32>
    %347 = arith.addf %343, %346 : vector<16x64xf32>
    %cst_165 = arith.constant 0.000000e+00 : f32
    %348 = vector.broadcast %cst_165 : f32 to vector<16x64xf32>
    %349 = arith.maximumf %347, %348 : vector<16x64xf32>
    %c1_166 = arith.constant 1 : index
    %c0_167 = arith.constant 0 : index
    %c0_168 = arith.constant 0 : index
    %350 = vector.load %arg10[%c1_166, %c0_167, %c0_168] : memref<2x64x32xf32, #tpu.memory_space<vmem>>, vector<1x64x32xf32>
    %351 = vector.shape_cast %350 : vector<1x64x32xf32> to vector<64x32xf32>
    %cst_169 = arith.constant dense<0.000000e+00> : vector<16x32xf32>
    %352 = tpu.matmul %349, %351, %cst_169 {dimension_numbers = #tpu.dot_dimension_numbers<[1], [0], [0], [1], [0, 0, 1, 1], [], []>} : vector<16x64xf32>, vector<64x32xf32>, vector<16x32xf32> -> vector<16x32xf32>
    %c1_170 = arith.constant 1 : index
    %c0_171 = arith.constant 0 : index
    %c0_172 = arith.constant 0 : index
    %353 = vector.load %arg11[%c1_170, %c0_171, %c0_172] : memref<2x1x32xf32, #tpu.memory_space<vmem>>, vector<1x1x32xf32>
    %354 = vector.shape_cast %353 : vector<1x1x32xf32> to vector<1x32xf32>
    %355 = vector.broadcast %354 : vector<1x32xf32> to vector<16x32xf32>
    %356 = arith.addf %352, %355 : vector<16x32xf32>
    %357 = arith.addf %340, %356 : vector<16x32xf32>
    %c1_173 = arith.constant 1 : index
    %c0_174 = arith.constant 0 : index
    %c0_175 = arith.constant 0 : index
    %358 = vector.load %arg12[%c1_173, %c0_174, %c0_175] : memref<2x1x32xf32, #tpu.memory_space<vmem>>, vector<1x1x32xf32>
    %359 = vector.shape_cast %358 : vector<1x1x32xf32> to vector<1x32xf32>
    %c1_176 = arith.constant 1 : index
    %c0_177 = arith.constant 0 : index
    %c0_178 = arith.constant 0 : index
    %360 = vector.load %arg13[%c1_176, %c0_177, %c0_178] : memref<2x1x32xf32, #tpu.memory_space<vmem>>, vector<1x1x32xf32>
    %361 = vector.shape_cast %360 : vector<1x1x32xf32> to vector<1x32xf32>
    %cst_179 = arith.constant dense<0.000000e+00> : vector<16xf32>
    %362 = vector.multi_reduction <add>, %357, %cst_179 [1] : vector<16x32xf32> to vector<16xf32>
    %363 = vector.shape_cast %362 : vector<16xf32> to vector<16x1xf32>
    %cst_180 = arith.constant 3.200000e+01 : f32
    %364 = vector.broadcast %cst_180 : f32 to vector<16x1xf32>
    %365 = arith.divf %363, %364 : vector<16x1xf32>
    %366 = vector.broadcast %365 : vector<16x1xf32> to vector<16x32xf32>
    %367 = arith.subf %357, %366 : vector<16x32xf32>
    %368 = arith.mulf %367, %367 : vector<16x32xf32>
    %cst_181 = arith.constant dense<0.000000e+00> : vector<16xf32>
    %369 = vector.multi_reduction <add>, %368, %cst_181 [1] : vector<16x32xf32> to vector<16xf32>
    %370 = vector.shape_cast %369 : vector<16xf32> to vector<16x1xf32>
    %cst_182 = arith.constant 3.200000e+01 : f32
    %371 = vector.broadcast %cst_182 : f32 to vector<16x1xf32>
    %372 = arith.divf %370, %371 : vector<16x1xf32>
    %373 = vector.broadcast %365 : vector<16x1xf32> to vector<16x32xf32>
    %374 = arith.subf %357, %373 : vector<16x32xf32>
    %cst_183 = arith.constant 9.99999974E-6 : f32
    %375 = vector.broadcast %cst_183 : f32 to vector<16x1xf32>
    %376 = arith.addf %372, %375 : vector<16x1xf32>
    %377 = math.rsqrt %376 : vector<16x1xf32>
    %378 = vector.broadcast %377 : vector<16x1xf32> to vector<16x32xf32>
    %379 = arith.mulf %374, %378 : vector<16x32xf32>
    %380 = vector.broadcast %359 : vector<1x32xf32> to vector<16x32xf32>
    %381 = arith.mulf %379, %380 : vector<16x32xf32>
    %382 = vector.broadcast %361 : vector<1x32xf32> to vector<16x32xf32>
    %383 = arith.addf %381, %382 : vector<16x32xf32>
    %c1_184 = arith.constant 1 : index
    %c0_185 = arith.constant 0 : index
    %c0_186 = arith.constant 0 : index
    %384 = vector.load %arg14[%c1_184, %c0_185, %c0_186] : memref<2x16x32xf32, #tpu.memory_space<vmem>>, vector<1x16x32xf32>
    %385 = vector.shape_cast %384 : vector<1x16x32xf32> to vector<16x32xf32>
    %386 = vector.shape_cast %383 : vector<16x32xf32> to vector<1x16x32xf32>
    tpu.vector_store %arg14[%c1_184, %c0_185, %c0_186], %386 {strides = array<i32>} : memref<2x16x32xf32, #tpu.memory_space<vmem>>, vector<1x16x32xf32>,
    return
  }
}

</mosaic_0001>

<bundles_post_ra>
// kernel: encoder_forward.1
= control target key start
LH: loop header
LB: loop body
LE: loop exit
PB: predicated region body
PF: predicated region fallthrough
CT: control target
= control target key end

     0   :  { %vm86_vm0 = vcmask 261120   ;;  %v4405_v6 = vmov 0.0   ;;  %vm4406_vm1 = vmmov 0   ;;  %s4407_s16 = smov 96   ;;  %vm171_vm2 = vcmask 64512   ;;  %s4410_s19 = smov 88   ;;  %s5153_s2 = inlined_call_operand.vmem [shape: f32[2,32,96], index: 2, kind: input, shape index: {}]   ;;  %s5154_s0 = inlined_call_operand.vmem [shape: f32[16,32], index: 0, kind: input, shape index: {}]   ;;  %s5155_s3 = inlined_call_operand.vmem [shape: f32[2,1,96], index: 3, kind: input, shape index: {}]   ;;  %s5156_s1 = inlined_call_operand.vmem [shape: f32[2,8], index: 1, kind: input, shape index: {}]   ;;  %s5157_s15 = inlined_call_operand.vmem [shape: f32[2,4,2,8,8], index: 15, kind: output, shape index: {1}]   ;;  %s5158_s4 = inlined_call_operand.vmem [shape: f32[2,32,32], index: 4, kind: input, shape index: {}]   ;;  %s5159_s5 = inlined_call_operand.vmem [shape: f32[2,1,32], index: 5, kind: input, shape index: {}]   ;;  %s5160_s8 = inlined_call_operand.vmem [shape: f32[2,32,64], index: 8, kind: input, shape index: {}]   ;;  %s5161_s10 = inlined_call_operand.vmem [shape: f32[2,64,32], index: 10, kind: input, shape index: {}]   ;;  %s5162_s6 = inlined_call_operand.vmem [shape: f32[2,1,32], index: 6, kind: input, shape index: {}]   ;;  %s5163_s7 = inlined_call_operand.vmem [shape: f32[2,1,32], index: 7, kind: input, shape index: {}]   ;;  %s5164_s9 = inlined_call_operand.vmem [shape: f32[2,1,64], index: 9, kind: input, shape index: {}]   ;;  %s5165_s11 = inlined_call_operand.vmem [shape: f32[2,1,32], index: 11, kind: input, shape index: {}]   ;;  %s5166_s12 = inlined_call_operand.vmem [shape: f32[2,1,32], index: 12, kind: input, shape index: {}]   ;;  %s5167_s13 = inlined_call_operand.vmem [shape: f32[2,1,32], index: 13, kind: input, shape index: {}]   ;;  %s5168_s14 = inlined_call_operand.vmem [shape: f32[2,16,32], index: 14, kind: output, shape index: {0}]  }
   0x1   :  { %v78_v0 = vld [vmem:[%s5153_s2 + $0x18] sm:$0xff]  ;;  %v77_v1 = vld [vmem:[%s5153_s2 + $0x10] sm:$0xff]  ;;  %v4511_v2 = vld [vmem:[%s5154_s0] sm:$0xff]  ;;  %4065 = vmatprep.subr.mxu0 %v4405_v6  ;;  %4067 = vmatprep.mubr.msk.f32.mxu0 %vm4406_vm1, %v4405_v6  ;;  %v4408_v14 = vmov 1966171168   ;;  %v64_v16 = vlaneseq  ;;  %s4411_s20 = smov 120  }
   0x2   :  { %4044 = vmatprep.subr.mxu1 %v78_v0  ;;  %v76_v3 = vld [vmem:[%s5153_s2 + $0x8] sm:$0xff]  ;;  %4052 = vmatprep.mubr.msk.f32.mxu1 %vm86_vm0, %v4511_v2  ;;  %v75_v4 = vld [vmem:[%s5153_s2] sm:$0xff]  ;;  %v62_v15 = vunpack.c.l.s4 %v4408_v14  ;;  %s4412_s25 = smov 56   ;;  %s4413_s26 = smov 80   ;;  %vm1553_vm3 = vcmask 195584   ;;  %vm1550_vm4 = vcmask 130048  }
   0x3   :  { %4045 = vmatpush3.msra.mxu1 %v78_v0  ;;  %v4524_v5 = vld [vmem:[%s5154_s0 + $0x8] sm:$0xff]  ;;  %v3800_v8 = vld [vmem:[%s5155_s3] ss:$0 sm:$0xff]  ;;  %v65_v18 = vshrl.u32 %v64_v16, 7  ;;  %s4414_s27 = smov 112   ;;  %s4415_s17 = smov 48  }
   0x4   :  { %4046 = vmatprep.subr.mxu1 %v77_v1  ;;  %v63_v17 = vunpack.c.0.s8 %v62_v15  ;;  %v3799_v20 = vld.sshfl [vmem:[%s5156_s1] sm:$0x11 pattern:$0x75316420]  ;;  %s4409_s1 = smov 64   ;;  %s4416_s18 = smov 72  }
   0x5   :  { %4047 = vmatpush3.msra.mxu1 %v77_v1  ;;  %v60_v21 = vcombine.high %v3799_v20, %v3799_v20  ;;  %v327_v23 = vsub.s32 0, %v65_v18  ;;  %s5175_s21 = smov 104   ;;  %s5173_s29 = smov 40   ;;  %vm1804_vm5 = vcmask 523264  }
   0x6   :  { %4048 = vmatprep.subr.mxu1 %v76_v3  ;;  %v66_v19 = vsub.s32 %v63_v17, %v65_v18  ;;  %s5171_s0 = smov 8   ;;  %s5169_s30 = smov 16  }
   0x7   :  { %4049 = vmatpush3.msra.mxu1 %v76_v3  ;;  %s5179_s22 = smov 104   ;;  %s5180_s24 = smov 40  }
   0x8   :  { %4050 = vmatprep.subr.mxu1 %v75_v4  ;;  %v67_v22 = vrot.slane %v3799_v20, %v66_v19  ;;  %v74_v25 = vrot.slane %v60_v21, %v66_v19  ;;  %s5181_s28 = smov 8  }
   0x9   :  { %4051 = vmatpush3.msra.mxu1 %v75_v4 }
   0xa   :  { %4053 = vmatmul.mubr.msk.f32.vlgmr.msra.gmra.mxu1 %vm86_vm0, %v4524_v5  ;;  %4055 = vmatprep.subr.mxu1 %v4405_v6  ;;  %v4560_v24 = vrot.slane %v67_v22, %v327_v23  ;;  %v4563_v30 = vrot.slane %v74_v25, %v327_v23 }
   0xb   :  { %4057 = vmatprep.mubr.msk.f32.mxu1 %vm4406_vm1, %v4405_v6 }
  0xca   :  { %v4054_v7 = vpop.f32.mrf.mxu1 }
  0xcb   :  { %v4541_v11 = vadd.f32 %v4054_v7, %v3800_v8 }
  0xcc   :  { %v159_v9 = vpop.f32.mrf.mxu1 }
  0xcd   :  { %v4537_v10 = vadd.f32 %v3800_v8, %v159_v9 }
  0xcf   :  { %169 = vrot.lane.b32.xlu0 %v4537_v10, %s4407_s16 }
  0xd3   :  { %247 = vrot.lane.b32.xlu0 %v4541_v11, %s4407_s16 }
 0x141   :  { %v170_v12 = vpop.permute.xlu0 %169 }
 0x142   :  { %4056 = vmatpush3.xpose.msk.msra.mxu1 %vm171_vm2, %v170_v12 }
 0x143   :  { %4060 = vmatprep.subr.mxu1 %v4405_v6 }
 0x145   :  { %4058 = vmatmul.mubr.msk.f32.vlgmr.msra.gmra.mxu1 %vm171_vm2, %v4537_v10  ;;  %v248_v13 = vpop.permute.xlu0 %247 }
 0x146   :  { %4061 = vmatpush3.xpose.msk.msra.mxu1 %vm171_vm2, %v248_v13  ;;  %4062 = vmatprep.mubr.msk.f32.mxu1 %vm4406_vm1, %v4405_v6 }
 0x147   :  { %4070 = vmatprep.subr.mxu1 %v4405_v6 }
 0x149   :  { %4063 = vmatmul.mubr.msk.f32.vlgmr.msra.gmra.mxu1 %vm171_vm2, %v4541_v11 }
 0x14a   :  { %4072 = vmatprep.mubr.msk.f32.mxu1 %vm4406_vm1, %v4405_v6 }
 0x205   :  { %v242_v26 = vpop.f32.mrf.mxu1 }
 0x206   :  { %v323_v27 = vmul.f32 0.35355338, %v242_v26 }
 0x207   :  { %v4059_v28 = vpop.f32.mrf.mxu1 }
 0x208   :  { %v335_v29 = vadd.f32 %v4560_v24, %v323_v27 }
 0x209   :  { %v319_v31 = vpop.f32.mrf.mxu1 }
 0x20a   :  { %v324_v32 = vmul.f32 0.35355338, %v319_v31  ;;  %v337_v33 = vsel %vm171_vm2, %v335_v29, -inf }
 0x20b   :  { %338 = vmax.xlane.f32.xlu1 %v337_v33  ;;  %v4064_v34 = vpop.f32.mrf.mxu1 }
 0x20c   :  { %v336_v35 = vadd.f32 %v4563_v30, %v324_v32 }
 0x20e   :  { %v340_v36 = vsel %vm171_vm2, %v336_v35, -inf }
 0x20f   :  { %341 = vmax.xlane.f32.xlu1 %v340_v36 }
 0x220   :  { %361 = vrot.lane.b32.xlu1 %v4537_v10, %s4409_s1 }
 0x224   :  { %437 = vrot.lane.b32.xlu1 %v4541_v11, %s4409_s1 }
 0x228   :  { %515 = vrot.lane.b32.xlu1 %v4537_v10, %s4410_s19 }
 0x22c   :  { %593 = vrot.lane.b32.xlu1 %v4541_v11, %s4410_s19 }
 0x294   :  { %v339_v37 = vpop.xlane.xlu1 %338 }
 0x295   :  { %v343_v38 = vsub.f32 %v335_v29, %v339_v37 }
 0x297   :  { %v345_v39 = vmul.f32 1.442695, %v343_v38 }
 0x298   :  { %v342_v40 = vpop.xlane.xlu1 %341 }
 0x299   :  { %4325 = vpow2.f32 %v345_v39  ;;  %v344_v41 = vsub.f32 %v336_v35, %v342_v40 }
 0x29b   :  { %v347_v42 = vmul.f32 1.442695, %v344_v41 }
 0x29c   :  { %v362_v43 = vpop.permute.xlu1 %361 }
 0x29d   :  { %4327 = vpow2.f32 %v347_v42  ;;  %4066 = vmatpush3.msra.mxu0 %v362_v43 }
 0x29e   :  { %4075 = vmatprep.subr.mxu0 %v4405_v6 }
 0x2a0   :  { %v438_v44 = vpop.permute.xlu1 %437 }
 0x2a1   :  { %4071 = vmatpush3.msra.mxu1 %v438_v44 }
 0x2a2   :  { %4080 = vmatprep.subr.mxu1 %v4405_v6 }
 0x2a4   :  { %v516_v49 = vpop.permute.xlu1 %515 }
 0x2a6   :  { %v4326_v45 = vpop.eup %4325 }
 0x2a7   :  { %v349_v46 = vsel %vm171_vm2, %v4326_v45, 0.0 }
 0x2a8   :  { %350 = vadd.xlane.f32.xlu0 %v349_v46  ;;  %v594_v50 = vpop.permute.xlu1 %593 }
 0x2aa   :  { %v4328_v47 = vpop.eup %4327 }
 0x2ab   :  { %v352_v48 = vsel %vm171_vm2, %v4328_v47, 0.0 }
 0x2ac   :  { %353 = vadd.xlane.f32.xlu1 %v352_v48 }
 0x2bd   :  { %591 = vrot.lane.b32.xlu1 %v4541_v11, %s4411_s20 }
 0x2be   :  { %513 = vrot.lane.b32.xlu0 %v4537_v10, %s4411_s20 }
 0x331   :  { %v351_v51 = vpop.xlane.xlu0 %350 }
 0x332   :  { %4329 = vrcp.f32 %v351_v51 }
 0x335   :  { %v354_v52 = vpop.xlane.xlu1 %353  ;;  %v514_v57 = vpop.permute.xlu0 %513 }
 0x336   :  { %4331 = vrcp.f32 %v354_v52 }
 0x339   :  { %v592_v58 = vpop.permute.xlu1 %591 }
 0x33f   :  { %v4330_v53 = vpop.eup %4329 }
 0x340   :  { %v357_v54 = vmul.f32 %v4330_v53, %v4326_v45 }
 0x342   :  { %359 = vst.msk [vmem:[%s5157_s15] sm:$0xff] %vm171_vm2, %v357_v54  ;;  %4068 = vmatmul.mubr.msk.f32.vlgmr.msra.gmra.mxu0 %vm171_vm2, %v357_v54 }
 0x343   :  { %v4332_v55 = vpop.eup %4331  ;;  %4076 = vmatpush3.xpose.msk.msra.mxu0 %vm171_vm2, %v516_v49  ;;  %4077 = vmatprep.mubr.msk.f32.mxu0 %vm4406_vm1, %v4405_v6 }
 0x344   :  { %v358_v56 = vmul.f32 %v4332_v55, %v4328_v47  ;;  %4085 = vmatprep.subr.mxu0 %v4405_v6 }
 0x346   :  { %360 = vst.msk [vmem:[%s5157_s15 + $0x8] sm:$0xff] %vm171_vm2, %v358_v56  ;;  %4073 = vmatmul.mubr.msk.f32.vlgmr.msra.gmra.mxu1 %vm171_vm2, %v358_v56  ;;  %4078 = vmatmul.mubr.msk.f32.vlgmr.msra.gmra.mxu0 %vm171_vm2, %v514_v57 }
 0x347   :  { %4081 = vmatpush3.xpose.msk.msra.mxu1 %vm171_vm2, %v594_v50  ;;  %4082 = vmatprep.mubr.msk.f32.mxu1 %vm4406_vm1, %v4405_v6 }
 0x348   :  { %4090 = vmatprep.subr.mxu1 %v4405_v6  ;;  %4087 = vmatprep.mubr.msk.f32.mxu0 %vm4406_vm1, %v4405_v6 }
 0x34a   :  { %4083 = vmatmul.mubr.msk.f32.vlgmr.msra.gmra.mxu1 %vm171_vm2, %v592_v58 }
 0x34b   :  { %4092 = vmatprep.mubr.msk.f32.mxu1 %vm4406_vm1, %v4405_v6 }
 0x402   :  { %v4608_v59 = vpop.f32.mrf.mxu0 }
 0x404   :  { %v4069_v60 = vpop.f32.mrf.mxu0 }
 0x406   :  { %v4610_v61 = vpop.f32.mrf.mxu1  ;;  %v587_v62 = vpop.f32.mrf.mxu0 }
 0x407   :  { %v669_v63 = vmul.f32 0.35355338, %v587_v62 }
 0x408   :  { %v4074_v0 = vpop.f32.mrf.mxu1  ;;  %v4079_v1 = vpop.f32.mrf.mxu0 }
 0x409   :  { %v671_v3 = vadd.f32 %v669_v63, %v4560_v24 }
 0x40a   :  { %v665_v4 = vpop.f32.mrf.mxu1 }
 0x40b   :  { %v670_v7 = vmul.f32 0.35355338, %v665_v4  ;;  %v673_v8 = vsel %vm171_vm2, %v671_v3, -inf }
 0x40c   :  { %v4084_v9 = vpop.f32.mrf.mxu1  ;;  %674 = vmax.xlane.f32.xlu1 %v673_v8 }
 0x40d   :  { %v672_v12 = vadd.f32 %v670_v7, %v4563_v30 }
 0x40f   :  { %v676_v13 = vsel %vm171_vm2, %v672_v12, -inf }
 0x410   :  { %677 = vmax.xlane.f32.xlu0 %v676_v13 }
 0x41d   :  { %698 = vrot.lane.b32.xlu1 %v4537_v10, %s4412_s25 }
 0x421   :  { %852 = vrot.lane.b32.xlu1 %v4537_v10, %s4413_s26 }
 0x425   :  { %930 = vrot.lane.b32.xlu1 %v4541_v11, %s4413_s26 }
 0x426   :  { %774 = vrot.lane.b32.xlu0 %v4541_v11, %s4412_s25 }
 0x42a   :  { %850 = vrot.lane.b32.xlu0 %v4537_v10, %s4414_s27 }
 0x495   :  { %v675_v14 = vpop.xlane.xlu1 %674 }
 0x496   :  { %v679_v15 = vsub.f32 %v671_v3, %v675_v14 }
 0x498   :  { %v681_v16 = vmul.f32 1.442695, %v679_v15 }
 0x499   :  { %v699_v17 = vpop.permute.xlu1 %698  ;;  %v678_v18 = vpop.xlane.xlu0 %677 }
 0x49a   :  { %4333 = vpow2.f32 %v681_v16  ;;  %v680_v19 = vsub.f32 %v672_v12, %v678_v18  ;;  %4086 = vmatpush3.msra.mxu0 %v699_v17 }
 0x49b   :  { %4095 = vmatprep.subr.mxu0 %v4405_v6 }
 0x49c   :  { %v683_v20 = vmul.f32 1.442695, %v680_v19 }
 0x49d   :  { %v775_v21 = vpop.permute.xlu0 %774  ;;  %v853_v27 = vpop.permute.xlu1 %852 }
 0x49e   :  { %4335 = vpow2.f32 %v683_v20  ;;  %4091 = vmatpush3.msra.mxu1 %v775_v21 }
 0x49f   :  { %4100 = vmatprep.subr.mxu1 %v4405_v6 }
 0x4a1   :  { %v931_v28 = vpop.permute.xlu1 %930  ;;  %v851_v36 = vpop.permute.xlu0 %850 }
 0x4a7   :  { %v4334_v22 = vpop.eup %4333 }
 0x4a8   :  { %v685_v23 = vsel %vm171_vm2, %v4334_v22, 0.0 }
 0x4a9   :  { %686 = vadd.xlane.f32.xlu1 %v685_v23 }
 0x4ab   :  { %v4336_v25 = vpop.eup %4335 }
 0x4ac   :  { %v688_v26 = vsel %vm171_vm2, %v4336_v25, 0.0 }
 0x4ad   :  { %689 = vadd.xlane.f32.xlu1 %v688_v26 }
 0x4be   :  { %928 = vrot.lane.b32.xlu1 %v4541_v11, %s4414_s27 }
 0x532   :  { %v687_v29 = vpop.xlane.xlu1 %686 }
 0x533   :  { %4337 = vrcp.f32 %v687_v29 }
 0x536   :  { %v690_v31 = vpop.xlane.xlu1 %689 }
 0x537   :  { %4339 = vrcp.f32 %v690_v31 }
 0x53a   :  { %v929_v37 = vpop.permute.xlu1 %928 }
 0x540   :  { %v4338_v32 = vpop.eup %4337 }
 0x541   :  { %v693_v33 = vmul.f32 %v4338_v32, %v4334_v22 }
 0x543   :  { %3813 = vst.msk [vmem:[%s5157_s15 + $0x10] sm:$0xff] %vm171_vm2, %v693_v33  ;;  %4088 = vmatmul.mubr.msk.f32.vlgmr.msra.gmra.mxu0 %vm171_vm2, %v693_v33 }
 0x544   :  { %v4340_v34 = vpop.eup %4339  ;;  %4096 = vmatpush3.xpose.msk.msra.mxu0 %vm171_vm2, %v853_v27  ;;  %4097 = vmatprep.mubr.msk.f32.mxu0 %vm4406_vm1, %v4405_v6 }
 0x545   :  { %v694_v35 = vmul.f32 %v4340_v34, %v4336_v25  ;;  %4105 = vmatprep.subr.mxu0 %v4405_v6 }
 0x547   :  { %3814 = vst.msk [vmem:[%s5157_s15 + $0x18] sm:$0xff] %vm171_vm2, %v694_v35  ;;  %4093 = vmatmul.mubr.msk.f32.vlgmr.msra.gmra.mxu1 %vm171_vm2, %v694_v35  ;;  %4098 = vmatmul.mubr.msk.f32.vlgmr.msra.gmra.mxu0 %vm171_vm2, %v851_v36 }
 0x548   :  { %4101 = vmatpush3.xpose.msk.msra.mxu1 %vm171_vm2, %v931_v28  ;;  %4102 = vmatprep.mubr.msk.f32.mxu1 %vm4406_vm1, %v4405_v6 }
 0x549   :  { %4110 = vmatprep.subr.mxu1 %v4405_v6  ;;  %4107 = vmatprep.mubr.msk.f32.mxu0 %vm4406_vm1, %v4405_v6 }
 0x54b   :  { %4103 = vmatmul.mubr.msk.f32.vlgmr.msra.gmra.mxu1 %vm171_vm2, %v929_v37 }
 0x54c   :  { %4112 = vmatprep.mubr.msk.f32.mxu1 %vm4406_vm1, %v4405_v6 }
 0x603   :  { %v4656_v38 = vpop.f32.mrf.mxu0 }
 0x605   :  { %v4089_v39 = vpop.f32.mrf.mxu0 }
 0x607   :  { %v4658_v40 = vpop.f32.mrf.mxu1  ;;  %v924_v41 = vpop.f32.mrf.mxu0 }
 0x608   :  { %v1006_v42 = vmul.f32 0.35355338, %v924_v41 }
 0x609   :  { %v4094_v43 = vpop.f32.mrf.mxu1  ;;  %v4099_v44 = vpop.f32.mrf.mxu0 }
 0x60a   :  { %v1008_v45 = vadd.f32 %v1006_v42, %v4560_v24 }
 0x60b   :  { %v1002_v46 = vpop.f32.mrf.mxu1 }
 0x60c   :  { %v1007_v47 = vmul.f32 0.35355338, %v1002_v46  ;;  %v1010_v48 = vsel %vm171_vm2, %v1008_v45, -inf }
 0x60d   :  { %v4104_v49 = vpop.f32.mrf.mxu1  ;;  %1011 = vmax.xlane.f32.xlu0 %v1010_v48 }
 0x60e   :  { %v1009_v50 = vadd.f32 %v1007_v47, %v4563_v30 }
 0x610   :  { %v1013_v51 = vsel %vm171_vm2, %v1009_v50, -inf }
 0x611   :  { %1014 = vmax.xlane.f32.xlu1 %v1013_v51  ;;  %v1557_v51 = vld [vmem:[%s5158_s4 + $0x8] sm:$0xff] }
 0x622   :  { %1035 = vrot.lane.b32.xlu1 %v4537_v10, %s4415_s17 }
 0x623   :  { %1111 = vrot.lane.b32.xlu0 %v4541_v11, %s4415_s17 }
 0x626   :  { %1189 = vrot.lane.b32.xlu1 %v4537_v10, %s4416_s18 }
 0x62a   :  { %1267 = vrot.lane.b32.xlu1 %v4541_v11, %s4416_s18 }
 0x62e   :  { %1265 = vrot.lane.b32.xlu1 %v4541_v11, %s5175_s21 }
 0x696   :  { %v1012_v52 = vpop.xlane.xlu0 %1011 }
 0x697   :  { %v1016_v53 = vsub.f32 %v1008_v45, %v1012_v52  ;;  %v1556_v52 = vld [vmem:[%s5158_s4] sm:$0xff] }
 0x699   :  { %v1018_v54 = vmul.f32 1.442695, %v1016_v53 }
 0x69a   :  { %v1015_v55 = vpop.xlane.xlu1 %1014  ;;  %v1112_v56 = vpop.permute.xlu0 %1111 }
 0x69b   :  { %4341 = vpow2.f32 %v1018_v54  ;;  %v1017_v57 = vsub.f32 %v1009_v50, %v1015_v55  ;;  %4111 = vmatpush3.msra.mxu1 %v1112_v56  ;;  %v1558_v50 = vld [vmem:[%s5158_s4 + $0x10] sm:$0xff] }
 0x69c   :  { %4120 = vmatprep.subr.mxu1 %v4405_v6 }
 0x69d   :  { %v1020_v58 = vmul.f32 1.442695, %v1017_v57 }
 0x69e   :  { %v1036_v60 = vpop.permute.xlu1 %1035 }
 0x69f   :  { %4343 = vpow2.f32 %v1020_v58  ;;  %4106 = vmatpush3.msra.mxu0 %v1036_v60 }
 0x6a0   :  { %4115 = vmatprep.subr.mxu0 %v4405_v6 }
 0x6a2   :  { %v1190_v7 = vpop.permute.xlu1 %1189 }
 0x6a6   :  { %v1268_v13 = vpop.permute.xlu1 %1267 }
 0x6a8   :  { %v4342_v62 = vpop.eup %4341 }
 0x6a9   :  { %v1022_v63 = vsel %vm171_vm2, %v4342_v62, 0.0 }
 0x6aa   :  { %1023 = vadd.xlane.f32.xlu0 %v1022_v63  ;;  %v1266_v16 = vpop.permute.xlu1 %1265 }
 0x6ac   :  { %v4344_v0 = vpop.eup %4343 }
 0x6ad   :  { %v1025_v1 = vsel %vm171_vm2, %v4344_v0, 0.0 }
 0x6ae   :  { %1026 = vadd.xlane.f32.xlu0 %v1025_v1 }
 0x6c4   :  { %1187 = vrot.lane.b32.xlu0 %v4537_v10, %s5175_s21  ;;  %s5182_s21 = smov 16  }
 0x733   :  { %v1024_v3 = vpop.xlane.xlu0 %1023 }
 0x734   :  { %4345 = vrcp.f32 %v1024_v3 }
 0x737   :  { %v1027_v4 = vpop.xlane.xlu0 %1026 }
 0x738   :  { %4347 = vrcp.f32 %v1027_v4 }
 0x73b   :  { %v1188_v15 = vpop.permute.xlu0 %1187 }
 0x741   :  { %v4346_v8 = vpop.eup %4345 }
 0x742   :  { %v1030_v9 = vmul.f32 %v4346_v8, %v4342_v62 }
 0x744   :  { %3821 = vst.msk [vmem:[%s5157_s15 + $0x20] sm:$0xff] %vm171_vm2, %v1030_v9  ;;  %4108 = vmatmul.mubr.msk.f32.vlgmr.msra.gmra.mxu0 %vm171_vm2, %v1030_v9 }
 0x745   :  { %v4348_v12 = vpop.eup %4347  ;;  %4116 = vmatpush3.xpose.msk.msra.mxu0 %vm171_vm2, %v1190_v7  ;;  %4117 = vmatprep.mubr.msk.f32.mxu0 %vm4406_vm1, %v4405_v6 }
 0x746   :  { %v1031_v14 = vmul.f32 %v4348_v12, %v4344_v0  ;;  %4125 = vmatprep.subr.mxu0 %v4405_v6 }
 0x748   :  { %3822 = vst.msk [vmem:[%s5157_s15 + $0x28] sm:$0xff] %vm171_vm2, %v1031_v14  ;;  %4113 = vmatmul.mubr.msk.f32.vlgmr.msra.gmra.mxu1 %vm171_vm2, %v1031_v14  ;;  %4118 = vmatmul.mubr.msk.f32.vlgmr.msra.gmra.mxu0 %vm171_vm2, %v1188_v15 }
 0x749   :  { %4121 = vmatpush3.xpose.msk.msra.mxu1 %vm171_vm2, %v1268_v13  ;;  %4122 = vmatprep.mubr.msk.f32.mxu1 %vm4406_vm1, %v4405_v6 }
 0x74a   :  { %4130 = vmatprep.subr.mxu1 %v4405_v6  ;;  %4127 = vmatprep.mubr.msk.f32.mxu0 %vm4406_vm1, %v4405_v6 }
 0x74c   :  { %4123 = vmatmul.mubr.msk.f32.vlgmr.msra.gmra.mxu1 %vm171_vm2, %v1266_v16 }
 0x74d   :  { %4132 = vmatprep.mubr.msk.f32.mxu1 %vm4406_vm1, %v4405_v6 }
 0x804   :  { %v1107_v17 = vpop.f32.mrf.mxu0 }
 0x806   :  { %v4109_v18 = vpop.f32.mrf.mxu0 }
 0x808   :  { %v1183_v19 = vpop.f32.mrf.mxu1  ;;  %v1261_v20 = vpop.f32.mrf.mxu0 }
 0x809   :  { %v1343_v21 = vmul.f32 0.35355338, %v1261_v20 }
 0x80a   :  { %v4114_v22 = vpop.f32.mrf.mxu1  ;;  %v4119_v23 = vpop.f32.mrf.mxu0 }
 0x80b   :  { %v1345_v25 = vadd.f32 %v1343_v21, %v4560_v24 }
 0x80c   :  { %v1339_v26 = vpop.f32.mrf.mxu1 }
 0x80d   :  { %v1344_v27 = vmul.f32 0.35355338, %v1339_v26  ;;  %v1347_v28 = vsel %vm171_vm2, %v1345_v25, -inf }
 0x80e   :  { %v4124_v29 = vpop.f32.mrf.mxu1  ;;  %1348 = vmax.xlane.f32.xlu0 %v1347_v28 }
 0x80f   :  { %v1346_v31 = vadd.f32 %v1344_v27, %v4563_v30  ;;  %v1697_v29 = vld [vmem:[%s5160_s8 + $0x10] sm:$0xff] }
 0x811   :  { %v1350_v32 = vsel %vm171_vm2, %v1346_v31, -inf }
 0x812   :  { %1351 = vmax.xlane.f32.xlu1 %v1350_v32  ;;  %v1695_v32 = vld [vmem:[%s5160_s8] sm:$0xff] }
 0x823   :  { %1372 = vrot.lane.b32.xlu1 %v4537_v10, %s5173_s29 }
 0x827   :  { %1526 = vrot.lane.b32.xlu1 %v4656_v38, %s5171_s0 }
 0x82b   :  { %1528 = vrot.lane.b32.xlu1 %v4658_v40, %s5171_s0  ;;  %s5177_s0 = smov 24  }
 0x82f   :  { %1536 = vrot.lane.b32.xlu1 %v1183_v19, %s5169_s30 }
 0x897   :  { %v1349_v33 = vpop.xlane.xlu0 %1348 }
 0x898   :  { %v1353_v34 = vsub.f32 %v1345_v25, %v1349_v33  ;;  %v1796_v33 = vld [vmem:[%s5161_s10 + $0x38] sm:$0xff] }
 0x89a   :  { %v1355_v35 = vmul.f32 1.442695, %v1353_v34  ;;  %v1795_v34 = vld [vmem:[%s5161_s10 + $0x30] sm:$0xff] }
 0x89b   :  { %v1352_v36 = vpop.xlane.xlu1 %1351 }
 0x89c   :  { %4349 = vpow2.f32 %v1355_v35  ;;  %v1354_v37 = vsub.f32 %v1346_v31, %v1352_v36  ;;  %v1696_v31 = vld [vmem:[%s5160_s8 + $0x8] sm:$0xff]  ;;  %v1793_v36 = vld [vmem:[%s5161_s10 + $0x20] sm:$0xff] }
 0x89d   :  { %v1794_v35 = vld [vmem:[%s5161_s10 + $0x28] sm:$0xff] }
 0x89e   :  { %v1357_v39 = vmul.f32 1.442695, %v1354_v37 }
 0x89f   :  { %v1373_v41 = vpop.permute.xlu1 %1372 }
 0x8a0   :  { %4351 = vpow2.f32 %v1357_v39  ;;  %4126 = vmatpush3.msra.mxu0 %v1373_v41 }
 0x8a3   :  { %v1527_v57 = vpop.permute.xlu1 %1526 }
 0x8a4   :  { %v1548_v62 = vsel %vm171_vm2, %v4608_v59, %v1527_v57  ;;  %v3833_v59 = vld [vmem:[%s5159_s5] ss:$0 sm:$0xff] }
 0x8a7   :  { %v1529_v58 = vpop.permute.xlu1 %1528 }
 0x8a8   :  { %v1549_v4 = vsel %vm171_vm2, %v4610_v61, %v1529_v58 }
 0x8a9   :  { %v4350_v10 = vpop.eup %4349 }
 0x8aa   :  { %v1359_v42 = vsel %vm171_vm2, %v4350_v10, 0.0 }
 0x8ab   :  { %1360 = vadd.xlane.f32.xlu0 %v1359_v42  ;;  %v1537_v63 = vpop.permute.xlu1 %1536 }
 0x8ac   :  { %v1552_v7 = vsel %vm1550_vm4, %v1549_v4, %v1537_v63 }
 0x8ad   :  { %v4352_v38 = vpop.eup %4351 }
 0x8ae   :  { %v1362_v40 = vsel %vm171_vm2, %v4352_v38, 0.0 }
 0x8af   :  { %1363 = vadd.xlane.f32.xlu0 %v1362_v40 }
 0x8c5   :  { %1448 = vrot.lane.b32.xlu0 %v4541_v11, %s5173_s29  ;;  %v1559_v11 = vld [vmem:[%s5158_s4 + $0x18] sm:$0xff] }
 0x8c6   :  { %4135 = vmatprep.subr.mxu0 %v1559_v11 }
 0x8c9   :  { %1534 = vrot.lane.b32.xlu0 %v1107_v17, %s5169_s30 }
 0x934   :  { %v1361_v43 = vpop.xlane.xlu0 %1360 }
 0x935   :  { %4353 = vrcp.f32 %v1361_v43  ;;  %v3836_v43 = vld [vmem:[%s5162_s6] ss:$0 sm:$0xff] }
 0x938   :  { %v1364_v44 = vpop.xlane.xlu0 %1363 }
 0x939   :  { %4355 = vrcp.f32 %v1364_v44 }
 0x93c   :  { %v1449_v45 = vpop.permute.xlu0 %1448 }
 0x93d   :  { %4131 = vmatpush3.msra.mxu1 %v1449_v45  ;;  %v3837_v45 = vld [vmem:[%s5163_s7] ss:$0 sm:$0xff] }
 0x940   :  { %v1535_v60 = vpop.permute.xlu0 %1534 }
 0x941   :  { %v1551_v0 = vsel %vm1550_vm4, %v1548_v62, %v1535_v60 }
 0x942   :  { %v4354_v46 = vpop.eup %4353 }
 0x943   :  { %v1367_v47 = vmul.f32 %v4354_v46, %v4350_v10 }
 0x945   :  { %3829 = vst.msk [vmem:[%s5157_s15 + $0x30] sm:$0xff] %vm171_vm2, %v1367_v47  ;;  %4128 = vmatmul.mubr.msk.f32.vlgmr.msra.gmra.mxu0 %vm171_vm2, %v1367_v47 }
 0x946   :  { %v4356_v48 = vpop.eup %4355  ;;  %4136 = vmatpush3.msra.mxu0 %v1559_v11 }
 0x947   :  { %v1368_v49 = vmul.f32 %v4356_v48, %v4352_v38  ;;  %4137 = vmatprep.subr.mxu0 %v1558_v50 }
 0x948   :  { %4138 = vmatpush3.msra.mxu0 %v1558_v50 }
 0x949   :  { %3830 = vst.msk [vmem:[%s5157_s15 + $0x38] sm:$0xff] %vm171_vm2, %v1368_v49  ;;  %4133 = vmatmul.mubr.msk.f32.vlgmr.msra.gmra.mxu1 %vm171_vm2, %v1368_v49  ;;  %4139 = vmatprep.subr.mxu0 %v1557_v51 }
 0x94a   :  { %4140 = vmatpush3.msra.mxu0 %v1557_v51  ;;  %v1792_v51 = vld [vmem:[%s5161_s10 + $0x18] sm:$0xff] }
 0x94b   :  { %4141 = vmatprep.subr.mxu0 %v1556_v52 }
 0x94c   :  { %4142 = vmatpush3.msra.mxu0 %v1556_v52  ;;  %v1791_v52 = vld [vmem:[%s5161_s10 + $0x10] sm:$0xff] }
 0x94d   :  { %4157 = vmatprep.subr.mxu0 %v1796_v33 }
 0xa05   :  { %v1444_v53 = vpop.f32.mrf.mxu0 }
 0xa06   :  { %1542 = vrot.lane.b32.xlu0 %v1444_v53, %s5177_s0  ;;  %v1790_v53 = vld [vmem:[%s5161_s10 + $0x8] sm:$0xff] }
 0xa07   :  { %v4129_v54 = vpop.f32.mrf.mxu0 }
 0xa08   :  { %v1789_v54 = vld [vmem:[%s5161_s10] sm:$0xff] }
 0xa09   :  { %v1520_v55 = vpop.f32.mrf.mxu1 }
 0xa0a   :  { %1544 = vrot.lane.b32.xlu1 %v1520_v55, %s5177_s0  ;;  %v3838_v55 = vld [vmem:[%s5164_s9] ss:$0 sm:$0xff] }
 0xa0b   :  { %v4134_v56 = vpop.f32.mrf.mxu1 }
 0xa78   :  { %v1543_v1 = vpop.permute.xlu0 %1542 }
 0xa79   :  { %v1554_v3 = vsel %vm1553_vm3, %v1551_v0, %v1543_v1  ;;  %v3841_v0 = vld [vmem:[%s5165_s11] ss:$0 sm:$0xff] }
 0xa7a   :  { %4143 = vmatprep.mubr.msk.f32.mxu0 %vm86_vm0, %v1554_v3 }
 0xa7c   :  { %v1545_v8 = vpop.permute.xlu1 %1544 }
 0xa7d   :  { %v1555_v9 = vsel %vm1553_vm3, %v1552_v7, %v1545_v8 }
 0xa7e   :  { %4144 = vmatmul.mubr.msk.f32.vlgmr.msra.gmra.mxu0 %vm86_vm0, %v1555_v9 }
 0xa7f   :  { %4158 = vmatpush3.msra.mxu0 %v1796_v33  ;;  %v3844_v33 = vld [vmem:[%s5166_s12] ss:$0 sm:$0xff] }
 0xa80   :  { %4159 = vmatprep.subr.mxu0 %v1795_v34 }
 0xa81   :  { %4160 = vmatpush3.msra.mxu0 %v1795_v34 }
 0xa82   :  { %4161 = vmatprep.subr.mxu0 %v1794_v35 }
 0xa83   :  { %4162 = vmatpush3.msra.mxu0 %v1794_v35 }
 0xa84   :  { %4163 = vmatprep.subr.mxu0 %v1793_v36 }
 0xa85   :  { %4164 = vmatpush3.msra.mxu0 %v1793_v36  ;;  %v3845_v36 = vld [vmem:[%s5167_s13] ss:$0 sm:$0xff] }
 0xa86   :  { %4165 = vmatprep.subr.mxu0 %v1792_v51 }
 0xa87   :  { %4166 = vmatpush3.msra.mxu0 %v1792_v51 }
 0xa88   :  { %4167 = vmatprep.subr.mxu0 %v1791_v52 }
 0xa89   :  { %4168 = vmatpush3.msra.mxu0 %v1791_v52 }
 0xa8a   :  { %4169 = vmatprep.subr.mxu0 %v1790_v53 }
 0xa8b   :  { %4170 = vmatpush3.msra.mxu0 %v1790_v53 }
 0xa8c   :  { %4171 = vmatprep.subr.mxu0 %v1789_v54 }
 0xa8d   :  { %4172 = vmatpush3.msra.mxu0 %v1789_v54 }
 0xa8e   :  { %4197 = vmatprep.subr.mxu0 %v4405_v6 }
 0xb3e   :  { %v4145_v12 = vpop.f32.mrf.mxu0 }
 0xb3f   :  { %v1645_v13 = vadd.f32 %v4145_v12, %v3833_v59 }
 0xb40   :  { %v1639_v14 = vpop.f32.mrf.mxu0 }
 0xb41   :  { %v1640_v15 = vadd.f32 %v3833_v59, %v1639_v14  ;;  %v1649_v16 = vadd.f32 %v1645_v13, %v4524_v5 }
 0xb43   :  { %v1655_v17 = vsel %vm86_vm0, %v1649_v16, 0.0  ;;  %v1648_v61 = vadd.f32 %v1640_v15, %v4511_v2  ;;  %v1698_v2 = vld [vmem:[%s5160_s8 + $0x18] sm:$0xff] }
 0xb44   :  { %1656 = vadd.xlane.f32.xlu1 %v1655_v17  ;;  %4146 = vmatprep.subr.mxu1 %v1698_v2 }
 0xb45   :  { %v1652_v18 = vsel %vm86_vm0, %v1648_v61, 0.0  ;;  %4147 = vmatpush3.msra.mxu1 %v1698_v2 }
 0xb46   :  { %1653 = vadd.xlane.f32.xlu0 %v1652_v18  ;;  %4148 = vmatprep.subr.mxu1 %v1697_v29 }
 0xb47   :  { %4149 = vmatpush3.msra.mxu1 %v1697_v29 }
 0xb48   :  { %4150 = vmatprep.subr.mxu1 %v1696_v31 }
 0xb49   :  { %4151 = vmatpush3.msra.mxu1 %v1696_v31 }
 0xb4a   :  { %4152 = vmatprep.subr.mxu1 %v1695_v32 }
 0xb4b   :  { %4153 = vmatpush3.msra.mxu1 %v1695_v32 }
 0xbcd   :  { %v1657_v19 = vpop.xlane.xlu1 %1656 }
 0xbce   :  { %v1660_v20 = vmul.f32 0.03125, %v1657_v19 }
 0xbcf   :  { %v1654_v21 = vpop.xlane.xlu0 %1653 }
 0xbd0   :  { %v1659_v22 = vmul.f32 0.03125, %v1654_v21  ;;  %v1662_v23 = vsub.f32 %v1649_v16, %v1660_v20 }
 0xbd2   :  { %v1661_v25 = vsub.f32 %v1648_v61, %v1659_v22  ;;  %v1664_v28 = vmul.f32 %v1662_v23, %v1662_v23  ;;  %v3849_v22 = vld [vmem:[%s5153_s2 + $0x38] sm:$0xff] }
 0xbd3   :  { %4176 = vmatprep.subr.mxu1 %v3849_v22 }
 0xbd4   :  { %v1663_v26 = vmul.f32 %v1661_v25, %v1661_v25  ;;  %v1668_v5 = vsel %vm86_vm0, %v1664_v28, 0.0 }
 0xbd6   :  { %v1665_v27 = vsel %vm86_vm0, %v1663_v26, 0.0  ;;  %v3846_v26 = vld [vmem:[%s5153_s2 + $0x20] sm:$0xff] }
 0xbd7   :  { %1666 = vadd.xlane.f32.xlu0 %v1665_v27 }
 0xbdb   :  { %1669 = vadd.xlane.f32.xlu0 %v1668_v5 }
 0xc60   :  { %v1667_v37 = vpop.xlane.xlu0 %1666 }
 0xc61   :  { %v1671_v39 = vmul.f32 0.03125, %v1667_v37 }
 0xc63   :  { %v1673_v41 = vadd.f32 1e-05, %v1671_v39 }
 0xc64   :  { %v1670_v10 = vpop.xlane.xlu0 %1669 }
 0xc65   :  { %4357 = vrsqrt.f32 %v1673_v41  ;;  %v1672_v42 = vmul.f32 0.03125, %v1670_v10 }
 0xc67   :  { %v1674_v38 = vadd.f32 1e-05, %v1672_v42 }
 0xc69   :  { %4359 = vrsqrt.f32 %v1674_v38  ;;  %v3851_v38 = vld [vmem:[%s5155_s3 + $0x1] ss:$0 sm:$0xff] }
 0xc72   :  { %v4358_v40 = vpop.eup %4357 }
 0xc73   :  { %v1677_v44 = vmul.f32 %v4358_v40, %v1661_v25  ;;  %v3847_v25 = vld [vmem:[%s5153_s2 + $0x28] sm:$0xff] }
 0xc75   :  { %v1685_v46 = vmul.f32 %v3836_v43, %v1677_v44 }
 0xc76   :  { %v4360_v47 = vpop.eup %4359 }
 0xc77   :  { %v1678_v48 = vmul.f32 %v4360_v47, %v1662_v23  ;;  %v1693_v49 = vadd.f32 %v3837_v45, %v1685_v46  ;;  %v3848_v23 = vld [vmem:[%s5153_s2 + $0x30] sm:$0xff] }
 0xc79   :  { %v1686_v11 = vmul.f32 %v3836_v43, %v1678_v48  ;;  %4154 = vmatprep.mubr.msk.f32.mxu1 %vm86_vm0, %v1693_v49 }
 0xc7b   :  { %v1694_v50 = vadd.f32 %v3837_v45, %v1686_v11 }
 0xc7d   :  { %4155 = vmatmul.mubr.msk.f32.vlgmr.msra.gmra.mxu1 %vm86_vm0, %v1694_v50 }
 0xc7e   :  { %4177 = vmatpush3.msra.mxu1 %v3849_v22 }
 0xc7f   :  { %4178 = vmatprep.subr.mxu1 %v3848_v23 }
 0xc80   :  { %4179 = vmatpush3.msra.mxu1 %v3848_v23 }
 0xc81   :  { %4180 = vmatprep.subr.mxu1 %v3847_v25 }
 0xc82   :  { %4181 = vmatpush3.msra.mxu1 %v3847_v25 }
 0xc83   :  { %4182 = vmatprep.subr.mxu1 %v3846_v26 }
 0xc84   :  { %4183 = vmatpush3.msra.mxu1 %v3846_v26 }
 0xc85   :  { %4187 = vmatprep.subr.mxu1 %v4405_v6 }
 0xd3d   :  { %v4156_v56 = vpop.f32.mrf.mxu1 }
 0xd3e   :  { %v1784_v57 = vadd.f32 %v4156_v56, %v3838_v55 }
 0xd3f   :  { %v1778_v58 = vpop.f32.mrf.mxu1 }
 0xd40   :  { %v1779_v60 = vadd.f32 %v3838_v55, %v1778_v58  ;;  %v1788_v63 = vmax.f32 %v1784_v57, 0.0 }
 0xd42   :  { %v1787_v62 = vmax.f32 %v1779_v60, 0.0 }
 0xd44   :  { %4173 = vmatprep.mubr.msk.f32.mxu0 %vm1804_vm5, %v1787_v62 }
 0xd45   :  { %4174 = vmatmul.mubr.msk.f32.vlgmr.msra.gmra.mxu0 %vm1804_vm5, %v1788_v63 }
 0xd46   :  { %4199 = vmatprep.mubr.msk.f32.mxu0 %vm4406_vm1, %v4405_v6 }
 0xe05   :  { %v4175_v1 = vpop.f32.mrf.mxu0 }
 0xe06   :  { %v1883_v3 = vadd.f32 %v4175_v1, %v3841_v0 }
 0xe07   :  { %v1877_v4 = vpop.f32.mrf.mxu0 }
 0xe08   :  { %v1878_v7 = vadd.f32 %v3841_v0, %v1877_v4  ;;  %v1887_v8 = vadd.f32 %v1883_v3, %v1694_v50 }
 0xe0a   :  { %v1893_v9 = vsel %vm86_vm0, %v1887_v8, 0.0  ;;  %v1886_v59 = vadd.f32 %v1878_v7, %v1693_v49 }
 0xe0b   :  { %1894 = vadd.xlane.f32.xlu0 %v1893_v9 }
 0xe0c   :  { %v1890_v12 = vsel %vm86_vm0, %v1886_v59, 0.0 }
 0xe0d   :  { %1891 = vadd.xlane.f32.xlu1 %v1890_v12 }
 0xe94   :  { %v1895_v13 = vpop.xlane.xlu0 %1894 }
 0xe95   :  { %v1897_v14 = vmul.f32 0.03125, %v1895_v13 }
 0xe96   :  { %v1892_v15 = vpop.xlane.xlu1 %1891 }
 0xe97   :  { %v1899_v16 = vsub.f32 %v1887_v8, %v1897_v14  ;;  %v1896_v17 = vmul.f32 0.03125, %v1892_v15 }
 0xe99   :  { %v1898_v61 = vsub.f32 %v1886_v59, %v1896_v17  ;;  %v1901_v18 = vmul.f32 %v1899_v16, %v1899_v16 }
 0xe9b   :  { %v1905_v19 = vsel %vm86_vm0, %v1901_v18, 0.0  ;;  %v1900_v20 = vmul.f32 %v1898_v61, %v1898_v61 }
 0xe9c   :  { %1906 = vadd.xlane.f32.xlu0 %v1905_v19 }
 0xe9d   :  { %v1902_v21 = vsel %vm86_vm0, %v1900_v20, 0.0 }
 0xe9e   :  { %1903 = vadd.xlane.f32.xlu1 %v1902_v21 }
 0xf25   :  { %v1907_v27 = vpop.xlane.xlu0 %1906 }
 0xf26   :  { %v1909_v28 = vmul.f32 0.03125, %v1907_v27 }
 0xf27   :  { %v1904_v5 = vpop.xlane.xlu1 %1903 }
 0xf28   :  { %v1911_v2 = vadd.f32 1e-05, %v1909_v28  ;;  %v1908_v29 = vmul.f32 0.03125, %v1904_v5 }
 0xf2a   :  { %4361 = vrsqrt.f32 %v1911_v2  ;;  %v1910_v31 = vadd.f32 1e-05, %v1908_v29 }
 0xf2c   :  { %4363 = vrsqrt.f32 %v1910_v31 }
 0xf37   :  { %v4362_v32 = vpop.eup %4361 }
 0xf38   :  { %v1915_v34 = vmul.f32 %v4362_v32, %v1899_v16 }
 0xf39   :  { %v4364_v35 = vpop.eup %4363 }
 0xf3a   :  { %v1914_v37 = vmul.f32 %v4364_v35, %v1898_v61  ;;  %v1923_v39 = vmul.f32 %v3844_v33, %v1915_v34 }
 0xf3c   :  { %v1922_v41 = vmul.f32 %v3844_v33, %v1914_v37  ;;  %v4841_v10 = vadd.f32 %v3845_v36, %v1923_v39 }
 0xf3e   :  { %v4843_v42 = vadd.f32 %v3845_v36, %v1922_v41  ;;  %1933 = vst.msk [vmem:[%s5168_s14 + $0x8] sm:$0xff] %vm86_vm0, %v4841_v10 }
 0xf40   :  { %1932 = vst.msk [vmem:[%s5168_s14] sm:$0xff] %vm86_vm0, %v4843_v42  ;;  %4184 = vmatprep.mubr.msk.f32.mxu1 %vm86_vm0, %v4843_v42 }
 0xf41   :  { %4185 = vmatmul.mubr.msk.f32.vlgmr.msra.gmra.mxu1 %vm86_vm0, %v4841_v10 }
 0xf42   :  { %4189 = vmatprep.mubr.msk.f32.mxu1 %vm4406_vm1, %v4405_v6 }
0x1001   :  { %v4186_v40 = vpop.f32.mrf.mxu1 }
0x1002   :  { %v4864_v43 = vadd.f32 %v4186_v40, %v3851_v38 }
0x1003   :  { %v2019_v44 = vpop.f32.mrf.mxu1 }
0x1004   :  { %v4866_v45 = vadd.f32 %v3851_v38, %v2019_v44  ;;  %2106 = vrot.lane.b32.xlu0 %v4864_v43, %s4407_s16 }
0x1006   :  { %2029 = vrot.lane.b32.xlu1 %v4866_v45, %s4407_s16 }
0x1076   :  { %v2107_v47 = vpop.permute.xlu0 %2106 }
0x1078   :  { %v2030_v46 = vpop.permute.xlu1 %2029 }
0x1079   :  { %4188 = vmatpush3.xpose.msk.msra.mxu1 %vm171_vm2, %v2030_v46 }
0x107a   :  { %4192 = vmatprep.subr.mxu1 %v4405_v6 }
0x107c   :  { %4190 = vmatmul.mubr.msk.f32.vlgmr.msra.gmra.mxu1 %vm171_vm2, %v4866_v45 }
0x107d   :  { %4193 = vmatpush3.xpose.msk.msra.mxu1 %vm171_vm2, %v2107_v47  ;;  %4194 = vmatprep.mubr.msk.f32.mxu1 %vm4406_vm1, %v4405_v6 }
0x107e   :  { %4202 = vmatprep.subr.mxu1 %v4405_v6 }
0x1080   :  { %4195 = vmatmul.mubr.msk.f32.vlgmr.msra.gmra.mxu1 %vm171_vm2, %v4864_v43 }
0x1081   :  { %4204 = vmatprep.mubr.msk.f32.mxu1 %vm4406_vm1, %v4405_v6 }
0x113c   :  { %v2101_v48 = vpop.f32.mrf.mxu1 }
0x113d   :  { %v2182_v49 = vmul.f32 0.35355338, %v2101_v48 }
0x113e   :  { %v4191_v11 = vpop.f32.mrf.mxu1 }
0x113f   :  { %v2184_v50 = vadd.f32 %v2182_v49, %v4560_v24 }
0x1140   :  { %v2178_v51 = vpop.f32.mrf.mxu1 }
0x1141   :  { %v2183_v52 = vmul.f32 0.35355338, %v2178_v51  ;;  %v2186_v53 = vsel %vm171_vm2, %v2184_v50, -inf }
0x1142   :  { %2187 = vmax.xlane.f32.xlu1 %v2186_v53  ;;  %v4196_v54 = vpop.f32.mrf.mxu1 }
0x1143   :  { %v2185_v55 = vadd.f32 %v2183_v52, %v4563_v30 }
0x1145   :  { %v2189_v56 = vsel %vm171_vm2, %v2185_v55, -inf }
0x1146   :  { %2190 = vmax.xlane.f32.xlu0 %v2189_v56 }
0x1153   :  { %2211 = vrot.lane.b32.xlu1 %v4866_v45, %s4409_s1 }
0x1157   :  { %2365 = vrot.lane.b32.xlu1 %v4866_v45, %s4410_s19 }
0x115b   :  { %2443 = vrot.lane.b32.xlu1 %v4864_v43, %s4410_s19 }
0x115c   :  { %2287 = vrot.lane.b32.xlu0 %v4864_v43, %s4409_s1 }
0x11cb   :  { %v2188_v57 = vpop.xlane.xlu1 %2187 }
0x11cc   :  { %v2192_v58 = vsub.f32 %v2184_v50, %v2188_v57 }
0x11ce   :  { %v2194_v60 = vmul.f32 1.442695, %v2192_v58 }
0x11cf   :  { %v2212_v62 = vpop.permute.xlu1 %2211  ;;  %v2191_v63 = vpop.xlane.xlu0 %2190 }
0x11d0   :  { %4365 = vpow2.f32 %v2194_v60  ;;  %v2193_v0 = vsub.f32 %v2185_v55, %v2191_v63  ;;  %4198 = vmatpush3.msra.mxu0 %v2212_v62 }
0x11d1   :  { %4207 = vmatprep.subr.mxu0 %v4405_v6 }
0x11d2   :  { %v2196_v1 = vmul.f32 1.442695, %v2193_v0 }
0x11d3   :  { %v2288_v3 = vpop.permute.xlu0 %2287  ;;  %v2366_v59 = vpop.permute.xlu1 %2365 }
0x11d4   :  { %4367 = vpow2.f32 %v2196_v1  ;;  %4203 = vmatpush3.msra.mxu1 %v2288_v3 }
0x11d5   :  { %4212 = vmatprep.subr.mxu1 %v4405_v6 }
0x11d7   :  { %v2444_v12 = vpop.permute.xlu1 %2443 }
0x11dd   :  { %v4366_v4 = vpop.eup %4365 }
0x11de   :  { %v2198_v7 = vsel %vm171_vm2, %v4366_v4, 0.0 }
0x11df   :  { %2199 = vadd.xlane.f32.xlu1 %v2198_v7 }
0x11e1   :  { %v4368_v8 = vpop.eup %4367 }
0x11e2   :  { %v2201_v9 = vsel %vm171_vm2, %v4368_v8, 0.0 }
0x11e3   :  { %2202 = vadd.xlane.f32.xlu0 %v2201_v9 }
0x11f0   :  { %2441 = vrot.lane.b32.xlu1 %v4864_v43, %s4411_s20 }
0x11f9   :  { %2363 = vrot.lane.b32.xlu0 %v4866_v45, %s4411_s20 }
0x1268   :  { %v2200_v13 = vpop.xlane.xlu1 %2199 }
0x1269   :  { %4369 = vrcp.f32 %v2200_v13 }
0x126c   :  { %v2203_v14 = vpop.xlane.xlu0 %2202  ;;  %v2442_v19 = vpop.permute.xlu1 %2441 }
0x126d   :  { %4371 = vrcp.f32 %v2203_v14 }
0x1270   :  { %v2364_v18 = vpop.permute.xlu0 %2363 }
0x1276   :  { %v4370_v15 = vpop.eup %4369 }
0x1277   :  { %v2206_v16 = vmul.f32 %v4370_v15, %v4366_v4 }
0x1279   :  { %3858 = vst.msk [vmem:[%s5157_s15 + $0x40] sm:$0xff] %vm171_vm2, %v2206_v16  ;;  %4200 = vmatmul.mubr.msk.f32.vlgmr.msra.gmra.mxu0 %vm171_vm2, %v2206_v16 }
0x127a   :  { %v4372_v17 = vpop.eup %4371  ;;  %4208 = vmatpush3.xpose.msk.msra.mxu0 %vm171_vm2, %v2366_v59  ;;  %4209 = vmatprep.mubr.msk.f32.mxu0 %vm4406_vm1, %v4405_v6 }
0x127b   :  { %v2207_v61 = vmul.f32 %v4372_v17, %v4368_v8  ;;  %4217 = vmatprep.subr.mxu0 %v4405_v6 }
0x127d   :  { %3859 = vst.msk [vmem:[%s5157_s15 + $0x48] sm:$0xff] %vm171_vm2, %v2207_v61  ;;  %4205 = vmatmul.mubr.msk.f32.vlgmr.msra.gmra.mxu1 %vm171_vm2, %v2207_v61  ;;  %4210 = vmatmul.mubr.msk.f32.vlgmr.msra.gmra.mxu0 %vm171_vm2, %v2364_v18 }
0x127e   :  { %4213 = vmatpush3.xpose.msk.msra.mxu1 %vm171_vm2, %v2444_v12  ;;  %4214 = vmatprep.mubr.msk.f32.mxu1 %vm4406_vm1, %v4405_v6 }
0x127f   :  { %4222 = vmatprep.subr.mxu1 %v4405_v6  ;;  %4219 = vmatprep.mubr.msk.f32.mxu0 %vm4406_vm1, %v4405_v6 }
0x1281   :  { %4215 = vmatmul.mubr.msk.f32.vlgmr.msra.gmra.mxu1 %vm171_vm2, %v2442_v19 }
0x1282   :  { %4224 = vmatprep.mubr.msk.f32.mxu1 %vm4406_vm1, %v4405_v6 }
0x1339   :  { %v4928_v20 = vpop.f32.mrf.mxu0 }
0x133b   :  { %v4201_v21 = vpop.f32.mrf.mxu0 }
0x133d   :  { %v4930_v22 = vpop.f32.mrf.mxu1  ;;  %v2437_v23 = vpop.f32.mrf.mxu0 }
0x133e   :  { %v2519_v25 = vmul.f32 0.35355338, %v2437_v23 }
0x133f   :  { %v4206_v26 = vpop.f32.mrf.mxu1  ;;  %v4211_v27 = vpop.f32.mrf.mxu0 }
0x1340   :  { %v2521_v28 = vadd.f32 %v2519_v25, %v4560_v24 }
0x1341   :  { %v2515_v5 = vpop.f32.mrf.mxu1 }
0x1342   :  { %v2520_v2 = vmul.f32 0.35355338, %v2515_v5  ;;  %v2523_v29 = vsel %vm171_vm2, %v2521_v28, -inf }
0x1343   :  { %2524 = vmax.xlane.f32.xlu0 %v2523_v29  ;;  %v4216_v31 = vpop.f32.mrf.mxu1 }
0x1344   :  { %v2522_v32 = vadd.f32 %v2520_v2, %v4563_v30 }
0x1346   :  { %v2526_v33 = vsel %vm171_vm2, %v2522_v32, -inf }
0x1347   :  { %2527 = vmax.xlane.f32.xlu1 %v2526_v33 }
0x1358   :  { %2548 = vrot.lane.b32.xlu1 %v4866_v45, %s4412_s25 }
0x1359   :  { %2624 = vrot.lane.b32.xlu0 %v4864_v43, %s4412_s25 }
0x135c   :  { %2702 = vrot.lane.b32.xlu1 %v4866_v45, %s4413_s26 }
0x1360   :  { %2780 = vrot.lane.b32.xlu1 %v4864_v43, %s4413_s26 }
0x1364   :  { %2778 = vrot.lane.b32.xlu1 %v4864_v43, %s4414_s27 }
0x13cc   :  { %v2525_v34 = vpop.xlane.xlu0 %2524 }
0x13cd   :  { %v2529_v35 = vsub.f32 %v2521_v28, %v2525_v34 }
0x13cf   :  { %v2531_v36 = vmul.f32 1.442695, %v2529_v35 }
0x13d0   :  { %v2625_v37 = vpop.permute.xlu0 %2624  ;;  %v2528_v39 = vpop.xlane.xlu1 %2527 }
0x13d1   :  { %4373 = vpow2.f32 %v2531_v36  ;;  %v2530_v41 = vsub.f32 %v2522_v32, %v2528_v39  ;;  %4223 = vmatpush3.msra.mxu1 %v2625_v37 }
0x13d2   :  { %4232 = vmatprep.subr.mxu1 %v4405_v6 }
0x13d3   :  { %v2533_v38 = vmul.f32 1.442695, %v2530_v41 }
0x13d4   :  { %v2549_v40 = vpop.permute.xlu1 %2548 }
0x13d5   :  { %4375 = vpow2.f32 %v2533_v38  ;;  %4218 = vmatpush3.msra.mxu0 %v2549_v40 }
0x13d6   :  { %4227 = vmatprep.subr.mxu0 %v4405_v6 }
0x13d8   :  { %v2703_v50 = vpop.permute.xlu1 %2702 }
0x13dc   :  { %v2781_v54 = vpop.permute.xlu1 %2780 }
0x13de   :  { %v4374_v44 = vpop.eup %4373 }
0x13df   :  { %v2535_v46 = vsel %vm171_vm2, %v4374_v44, 0.0 }
0x13e0   :  { %2536 = vadd.xlane.f32.xlu0 %v2535_v46  ;;  %v2779_v57 = vpop.permute.xlu1 %2778 }
0x13e2   :  { %v4376_v47 = vpop.eup %4375 }
0x13e3   :  { %v2538_v48 = vsel %vm171_vm2, %v4376_v47, 0.0 }
0x13e4   :  { %2539 = vadd.xlane.f32.xlu0 %v2538_v48 }
0x13fa   :  { %2700 = vrot.lane.b32.xlu0 %v4866_v45, %s4414_s27 }
0x1469   :  { %v2537_v49 = vpop.xlane.xlu0 %2536 }
0x146a   :  { %4377 = vrcp.f32 %v2537_v49 }
0x146d   :  { %v2540_v11 = vpop.xlane.xlu0 %2539 }
0x146e   :  { %4379 = vrcp.f32 %v2540_v11 }
0x1471   :  { %v2701_v56 = vpop.permute.xlu0 %2700 }
0x1477   :  { %v4378_v51 = vpop.eup %4377 }
0x1478   :  { %v2543_v52 = vmul.f32 %v4378_v51, %v4374_v44 }
0x147a   :  { %3866 = vst.msk [vmem:[%s5157_s15 + $0x50] sm:$0xff] %vm171_vm2, %v2543_v52  ;;  %4220 = vmatmul.mubr.msk.f32.vlgmr.msra.gmra.mxu0 %vm171_vm2, %v2543_v52 }
0x147b   :  { %v4380_v53 = vpop.eup %4379  ;;  %4228 = vmatpush3.xpose.msk.msra.mxu0 %vm171_vm2, %v2703_v50  ;;  %4229 = vmatprep.mubr.msk.f32.mxu0 %vm4406_vm1, %v4405_v6 }
0x147c   :  { %v2544_v55 = vmul.f32 %v4380_v53, %v4376_v47  ;;  %4237 = vmatprep.subr.mxu0 %v4405_v6 }
0x147e   :  { %3867 = vst.msk [vmem:[%s5157_s15 + $0x58] sm:$0xff] %vm171_vm2, %v2544_v55  ;;  %4225 = vmatmul.mubr.msk.f32.vlgmr.msra.gmra.mxu1 %vm171_vm2, %v2544_v55  ;;  %4230 = vmatmul.mubr.msk.f32.vlgmr.msra.gmra.mxu0 %vm171_vm2, %v2701_v56 }
0x147f   :  { %4233 = vmatpush3.xpose.msk.msra.mxu1 %vm171_vm2, %v2781_v54  ;;  %4234 = vmatprep.mubr.msk.f32.mxu1 %vm4406_vm1, %v4405_v6 }
0x1480   :  { %4242 = vmatprep.subr.mxu1 %v4405_v6  ;;  %4239 = vmatprep.mubr.msk.f32.mxu0 %vm4406_vm1, %v4405_v6 }
0x1482   :  { %4235 = vmatmul.mubr.msk.f32.vlgmr.msra.gmra.mxu1 %vm171_vm2, %v2779_v57 }
0x1483   :  { %4244 = vmatprep.mubr.msk.f32.mxu1 %vm4406_vm1, %v4405_v6 }
0x153a   :  { %v4976_v58 = vpop.f32.mrf.mxu0 }
0x153c   :  { %v4221_v60 = vpop.f32.mrf.mxu0 }
0x153e   :  { %v4978_v62 = vpop.f32.mrf.mxu1  ;;  %v2774_v63 = vpop.f32.mrf.mxu0 }
0x153f   :  { %v2856_v0 = vmul.f32 0.35355338, %v2774_v63 }
0x1540   :  { %v4226_v1 = vpop.f32.mrf.mxu1  ;;  %v4231_v3 = vpop.f32.mrf.mxu0 }
0x1541   :  { %v2858_v4 = vadd.f32 %v2856_v0, %v4560_v24 }
0x1542   :  { %v2852_v7 = vpop.f32.mrf.mxu1 }
0x1543   :  { %v2857_v8 = vmul.f32 0.35355338, %v2852_v7  ;;  %v2860_v9 = vsel %vm171_vm2, %v2858_v4, -inf }
0x1544   :  { %2861 = vmax.xlane.f32.xlu0 %v2860_v9  ;;  %v4236_v59 = vpop.f32.mrf.mxu1  ;;  %v3887_v9 = vld [vmem:[%s5158_s4 + $0x28] sm:$0xff] }
0x1545   :  { %v2859_v12 = vadd.f32 %v2857_v8, %v4563_v30  ;;  %v3888_v8 = vld [vmem:[%s5158_s4 + $0x30] sm:$0xff]  ;;  %v3886_v59 = vld [vmem:[%s5158_s4 + $0x20] sm:$0xff] }
0x1547   :  { %v2863_v13 = vsel %vm171_vm2, %v2859_v12, -inf }
0x1548   :  { %2864 = vmax.xlane.f32.xlu1 %v2863_v13 }
0x1559   :  { %2885 = vrot.lane.b32.xlu1 %v4866_v45, %s4415_s17 }
0x155a   :  { %2961 = vrot.lane.b32.xlu0 %v4864_v43, %s4415_s17 }
0x155d   :  { %3039 = vrot.lane.b32.xlu1 %v4866_v45, %s4416_s18 }
0x1561   :  { %3117 = vrot.lane.b32.xlu1 %v4864_v43, %s4416_s18 }
0x1565   :  { %3115 = vrot.lane.b32.xlu1 %v4864_v43, %s5179_s22 }
0x15cd   :  { %v2862_v14 = vpop.xlane.xlu0 %2861 }
0x15ce   :  { %v2866_v15 = vsub.f32 %v2858_v4, %v2862_v14 }
0x15d0   :  { %v2868_v16 = vmul.f32 1.442695, %v2866_v15 }
0x15d1   :  { %v2962_v17 = vpop.permute.xlu0 %2961  ;;  %v2865_v61 = vpop.xlane.xlu1 %2864 }
0x15d2   :  { %4381 = vpow2.f32 %v2868_v16  ;;  %v2867_v18 = vsub.f32 %v2859_v12, %v2865_v61  ;;  %4243 = vmatpush3.msra.mxu1 %v2962_v17 }
0x15d3   :  { %4252 = vmatprep.subr.mxu1 %v4405_v6 }
0x15d4   :  { %v2870_v19 = vmul.f32 1.442695, %v2867_v18 }
0x15d5   :  { %v2886_v21 = vpop.permute.xlu1 %2885 }
0x15d6   :  { %4383 = vpow2.f32 %v2870_v19  ;;  %4238 = vmatpush3.msra.mxu0 %v2886_v21 }
0x15d7   :  { %4247 = vmatprep.subr.mxu0 %v4405_v6 }
0x15d9   :  { %v3040_v2 = vpop.permute.xlu1 %3039 }
0x15dd   :  { %v3118_v33 = vpop.permute.xlu1 %3117 }
0x15df   :  { %v4382_v23 = vpop.eup %4381 }
0x15e0   :  { %v2872_v25 = vsel %vm171_vm2, %v4382_v23, 0.0 }
0x15e1   :  { %2873 = vadd.xlane.f32.xlu0 %v2872_v25  ;;  %v3116_v36 = vpop.permute.xlu1 %3115 }
0x15e3   :  { %v4384_v26 = vpop.eup %4383 }
0x15e4   :  { %v2875_v27 = vsel %vm171_vm2, %v4384_v26, 0.0 }
0x15e5   :  { %2876 = vadd.xlane.f32.xlu0 %v2875_v27 }
0x15fb   :  { %3037 = vrot.lane.b32.xlu0 %v4866_v45, %s5179_s22  ;;  %s5183_s22 = smov 24  }
0x166a   :  { %v2874_v28 = vpop.xlane.xlu0 %2873 }
0x166b   :  { %4385 = vrcp.f32 %v2874_v28 }
0x166e   :  { %v2877_v5 = vpop.xlane.xlu0 %2876 }
0x166f   :  { %4387 = vrcp.f32 %v2877_v5 }
0x1672   :  { %v3038_v35 = vpop.permute.xlu0 %3037 }
0x1678   :  { %v4386_v29 = vpop.eup %4385 }
0x1679   :  { %v2880_v31 = vmul.f32 %v4386_v29, %v4382_v23 }
0x167b   :  { %3874 = vst.msk [vmem:[%s5157_s15 + $0x60] sm:$0xff] %vm171_vm2, %v2880_v31  ;;  %4240 = vmatmul.mubr.msk.f32.vlgmr.msra.gmra.mxu0 %vm171_vm2, %v2880_v31 }
0x167c   :  { %v4388_v32 = vpop.eup %4387  ;;  %4248 = vmatpush3.xpose.msk.msra.mxu0 %vm171_vm2, %v3040_v2  ;;  %4249 = vmatprep.mubr.msk.f32.mxu0 %vm4406_vm1, %v4405_v6 }
0x167d   :  { %v2881_v34 = vmul.f32 %v4388_v32, %v4384_v26  ;;  %4257 = vmatprep.subr.mxu0 %v4405_v6 }
0x167f   :  { %3875 = vst.msk [vmem:[%s5157_s15 + $0x68] sm:$0xff] %vm171_vm2, %v2881_v34  ;;  %4245 = vmatmul.mubr.msk.f32.vlgmr.msra.gmra.mxu1 %vm171_vm2, %v2881_v34  ;;  %4250 = vmatmul.mubr.msk.f32.vlgmr.msra.gmra.mxu0 %vm171_vm2, %v3038_v35 }
0x1680   :  { %4253 = vmatpush3.xpose.msk.msra.mxu1 %vm171_vm2, %v3118_v33  ;;  %4254 = vmatprep.mubr.msk.f32.mxu1 %vm4406_vm1, %v4405_v6 }
0x1681   :  { %4262 = vmatprep.subr.mxu1 %v4405_v6  ;;  %4259 = vmatprep.mubr.msk.f32.mxu0 %vm4406_vm1, %v4405_v6 }
0x1683   :  { %4255 = vmatmul.mubr.msk.f32.vlgmr.msra.gmra.mxu1 %vm171_vm2, %v3116_v36 }
0x1684   :  { %4264 = vmatprep.mubr.msk.f32.mxu1 %vm4406_vm1, %v4405_v6 }
0x173b   :  { %v2957_v37 = vpop.f32.mrf.mxu0 }
0x173d   :  { %v4241_v39 = vpop.f32.mrf.mxu0 }
0x173f   :  { %v3033_v41 = vpop.f32.mrf.mxu1  ;;  %v3111_v38 = vpop.f32.mrf.mxu0 }
0x1740   :  { %v3193_v40 = vmul.f32 0.35355338, %v3111_v38 }
0x1741   :  { %v4246_v44 = vpop.f32.mrf.mxu1  ;;  %v4251_v46 = vpop.f32.mrf.mxu0 }
0x1742   :  { %v3195_v47 = vadd.f32 %v3193_v40, %v4560_v24 }
0x1743   :  { %v3189_v48 = vpop.f32.mrf.mxu1 }
0x1744   :  { %v3194_v49 = vmul.f32 0.35355338, %v3189_v48  ;;  %v3197_v11 = vsel %vm171_vm2, %v3195_v47, -inf  ;;  %v3900_v48 = vld [vmem:[%s5160_s8 + $0x30] sm:$0xff] }
0x1745   :  { %3198 = vmax.xlane.f32.xlu0 %v3197_v11  ;;  %v4256_v50 = vpop.f32.mrf.mxu1  ;;  %v3898_v11 = vld [vmem:[%s5160_s8 + $0x20] sm:$0xff] }
0x1746   :  { %v3196_v51 = vadd.f32 %v3194_v49, %v4563_v30  ;;  %v3899_v49 = vld [vmem:[%s5160_s8 + $0x28] sm:$0xff]  ;;  %v3913_v50 = vld [vmem:[%s5161_s10 + $0x78] sm:$0xff] }
0x1748   :  { %v3200_v52 = vsel %vm171_vm2, %v3196_v51, -inf }
0x1749   :  { %3201 = vmax.xlane.f32.xlu1 %v3200_v52  ;;  %v3911_v52 = vld [vmem:[%s5161_s10 + $0x68] sm:$0xff] }
0x175a   :  { %3222 = vrot.lane.b32.xlu1 %v4866_v45, %s5180_s24 }
0x175e   :  { %3376 = vrot.lane.b32.xlu1 %v4976_v58, %s5181_s28 }
0x1762   :  { %3378 = vrot.lane.b32.xlu1 %v4978_v62, %s5181_s28 }
0x1766   :  { %3386 = vrot.lane.b32.xlu1 %v3033_v41, %s5182_s21 }
0x17ce   :  { %v3199_v6 = vpop.xlane.xlu0 %3198 }
0x17cf   :  { %v3203_v24 = vsub.f32 %v3195_v47, %v3199_v6  ;;  %v3910_v6 = vld [vmem:[%s5161_s10 + $0x60] sm:$0xff] }
0x17d1   :  { %v3205_v53 = vmul.f32 1.442695, %v3203_v24 }
0x17d2   :  { %v3202_v54 = vpop.xlane.xlu1 %3201 }
0x17d3   :  { %4389 = vpow2.f32 %v3205_v53  ;;  %v3204_v30 = vsub.f32 %v3196_v51, %v3202_v54  ;;  %v3912_v51 = vld [vmem:[%s5161_s10 + $0x70] sm:$0xff] }
0x17d5   :  { %v3207_v55 = vmul.f32 1.442695, %v3204_v30 }
0x17d6   :  { %v3223_v56 = vpop.permute.xlu1 %3222 }
0x17d7   :  { %4391 = vpow2.f32 %v3207_v55  ;;  %4258 = vmatpush3.msra.mxu0 %v3223_v56 }
0x17da   :  { %v3377_v16 = vpop.permute.xlu1 %3376 }
0x17db   :  { %v3398_v18 = vsel %vm171_vm2, %v4928_v20, %v3377_v16  ;;  %v3891_v20 = vld [vmem:[%s5159_s5 + $0x1] ss:$0 sm:$0xff] }
0x17de   :  { %v3379_v17 = vpop.permute.xlu1 %3378 }
0x17df   :  { %v3399_v26 = vsel %vm171_vm2, %v4930_v22, %v3379_v17 }
0x17e0   :  { %v4390_v57 = vpop.eup %4389 }
0x17e1   :  { %v3209_v45 = vsel %vm171_vm2, %v4390_v57, 0.0 }
0x17e2   :  { %3210 = vadd.xlane.f32.xlu0 %v3209_v45  ;;  %v3387_v19 = vpop.permute.xlu1 %3386  ;;  %v3896_v45 = vld [vmem:[%s5162_s6 + $0x1] ss:$0 sm:$0xff] }
0x17e3   :  { %v3401_v27 = vsel %vm1550_vm4, %v3399_v26, %v3387_v19 }
0x17e4   :  { %v4392_v58 = vpop.eup %4391 }
0x17e5   :  { %v3212_v60 = vsel %vm171_vm2, %v4392_v58, 0.0 }
0x17e6   :  { %3213 = vadd.xlane.f32.xlu0 %v3212_v60  ;;  %v3897_v60 = vld [vmem:[%s5163_s7 + $0x1] ss:$0 sm:$0xff] }
0x17fc   :  { %3298 = vrot.lane.b32.xlu0 %v4864_v43, %s5180_s24  ;;  %v3889_v43 = vld [vmem:[%s5158_s4 + $0x38] sm:$0xff] }
0x17fd   :  { %4267 = vmatprep.subr.mxu0 %v3889_v43 }
0x1800   :  { %3384 = vrot.lane.b32.xlu0 %v2957_v37, %s5182_s21 }
0x186b   :  { %v3211_v62 = vpop.xlane.xlu0 %3210 }
0x186c   :  { %4393 = vrcp.f32 %v3211_v62 }
0x186f   :  { %v3214_v63 = vpop.xlane.xlu0 %3213 }
0x1870   :  { %4395 = vrcp.f32 %v3214_v63 }
0x1873   :  { %v3299_v0 = vpop.permute.xlu0 %3298 }
0x1874   :  { %4263 = vmatpush3.msra.mxu1 %v3299_v0 }
0x1877   :  { %v3385_v61 = vpop.permute.xlu0 %3384 }
0x1878   :  { %v3400_v21 = vsel %vm1550_vm4, %v3398_v18, %v3385_v61  ;;  %v3915_v61 = vld [vmem:[%s5165_s11 + $0x1] ss:$0 sm:$0xff] }
0x1879   :  { %v4394_v1 = vpop.eup %4393 }
0x187a   :  { %v3217_v3 = vmul.f32 %v4394_v1, %v4390_v57 }
0x187c   :  { %3882 = vst.msk [vmem:[%s5157_s15 + $0x70] sm:$0xff] %vm171_vm2, %v3217_v3  ;;  %4260 = vmatmul.mubr.msk.f32.vlgmr.msra.gmra.mxu0 %vm171_vm2, %v3217_v3 }
0x187d   :  { %v4396_v4 = vpop.eup %4395  ;;  %4268 = vmatpush3.msra.mxu0 %v3889_v43  ;;  %v3908_v43 = vld [vmem:[%s5161_s10 + $0x50] sm:$0xff] }
0x187e   :  { %v3218_v7 = vmul.f32 %v4396_v4, %v4392_v58  ;;  %4269 = vmatprep.subr.mxu0 %v3888_v8 }
0x187f   :  { %4270 = vmatpush3.msra.mxu0 %v3888_v8  ;;  %v3907_v8 = vld [vmem:[%s5161_s10 + $0x48] sm:$0xff] }
0x1880   :  { %3883 = vst.msk [vmem:[%s5157_s15 + $0x78] sm:$0xff] %vm171_vm2, %v3218_v7  ;;  %4265 = vmatmul.mubr.msk.f32.vlgmr.msra.gmra.mxu1 %vm171_vm2, %v3218_v7  ;;  %4271 = vmatprep.subr.mxu0 %v3887_v9  ;;  %v3909_v7 = vld [vmem:[%s5161_s10 + $0x58] sm:$0xff] }
0x1881   :  { %4272 = vmatpush3.msra.mxu0 %v3887_v9  ;;  %v3906_v9 = vld [vmem:[%s5161_s10 + $0x40] sm:$0xff] }
0x1882   :  { %4273 = vmatprep.subr.mxu0 %v3886_v59 }
0x1883   :  { %4274 = vmatpush3.msra.mxu0 %v3886_v59  ;;  %v3903_v59 = vld [vmem:[%s5164_s9 + $0x1] ss:$0 sm:$0xff] }
0x1884   :  { %4289 = vmatprep.subr.mxu0 %v3913_v50 }
0x193c   :  { %v3294_v12 = vpop.f32.mrf.mxu0 }
0x193d   :  { %3392 = vrot.lane.b32.xlu0 %v3294_v12, %s5183_s22 }
0x193e   :  { %v4261_v13 = vpop.f32.mrf.mxu0 }
0x1940   :  { %v3370_v14 = vpop.f32.mrf.mxu1 }
0x1941   :  { %3394 = vrot.lane.b32.xlu1 %v3370_v14, %s5183_s22 }
0x1942   :  { %v4266_v15 = vpop.f32.mrf.mxu1 }
0x19af   :  { %v3393_v23 = vpop.permute.xlu0 %3392 }
0x19b0   :  { %v3402_v25 = vsel %vm1553_vm3, %v3400_v21, %v3393_v23 }
0x19b1   :  { %4275 = vmatprep.mubr.msk.f32.mxu0 %vm86_vm0, %v3402_v25 }
0x19b3   :  { %v3395_v28 = vpop.permute.xlu1 %3394 }
0x19b4   :  { %v3403_v5 = vsel %vm1553_vm3, %v3401_v27, %v3395_v28 }
0x19b5   :  { %4276 = vmatmul.mubr.msk.f32.vlgmr.msra.gmra.mxu0 %vm86_vm0, %v3403_v5 }
0x19b6   :  { %4290 = vmatpush3.msra.mxu0 %v3913_v50 }
0x19b7   :  { %4291 = vmatprep.subr.mxu0 %v3912_v51 }
0x19b8   :  { %4292 = vmatpush3.msra.mxu0 %v3912_v51 }
0x19b9   :  { %4293 = vmatprep.subr.mxu0 %v3911_v52 }
0x19ba   :  { %4294 = vmatpush3.msra.mxu0 %v3911_v52 }
0x19bb   :  { %4295 = vmatprep.subr.mxu0 %v3910_v6 }
0x19bc   :  { %4296 = vmatpush3.msra.mxu0 %v3910_v6 }
0x19bd   :  { %4297 = vmatprep.subr.mxu0 %v3909_v7 }
0x19be   :  { %4298 = vmatpush3.msra.mxu0 %v3909_v7 }
0x19bf   :  { %4299 = vmatprep.subr.mxu0 %v3908_v43 }
0x19c0   :  { %4300 = vmatpush3.msra.mxu0 %v3908_v43 }
0x19c1   :  { %4301 = vmatprep.subr.mxu0 %v3907_v8 }
0x19c2   :  { %4302 = vmatpush3.msra.mxu0 %v3907_v8 }
0x19c3   :  { %4303 = vmatprep.subr.mxu0 %v3906_v9 }
0x19c4   :  { %4304 = vmatpush3.msra.mxu0 %v3906_v9 }
0x1a75   :  { %v4277_v2 = vpop.f32.mrf.mxu0 }
0x1a76   :  { %v3495_v29 = vadd.f32 %v4277_v2, %v3891_v20 }
0x1a77   :  { %v3489_v31 = vpop.f32.mrf.mxu0 }
0x1a78   :  { %v3499_v32 = vadd.f32 %v3495_v29, %v4841_v10  ;;  %v3490_v33 = vadd.f32 %v3891_v20, %v3489_v31 }
0x1a7a   :  { %v3507_v34 = vsel %vm86_vm0, %v3499_v32, 0.0  ;;  %v3498_v22 = vadd.f32 %v3490_v33, %v4843_v42  ;;  %v3901_v42 = vld [vmem:[%s5160_s8 + $0x38] sm:$0xff] }
0x1a7b   :  { %3508 = vadd.xlane.f32.xlu1 %v3507_v34  ;;  %4278 = vmatprep.subr.mxu1 %v3901_v42 }
0x1a7c   :  { %v3504_v35 = vsel %vm86_vm0, %v3498_v22, 0.0  ;;  %4279 = vmatpush3.msra.mxu1 %v3901_v42  ;;  %v3921_v42 = vld [vmem:[%s5167_s13 + $0x1] ss:$0 sm:$0xff] }
0x1a7d   :  { %3505 = vadd.xlane.f32.xlu0 %v3504_v35  ;;  %4280 = vmatprep.subr.mxu1 %v3900_v48 }
0x1a7e   :  { %4281 = vmatpush3.msra.mxu1 %v3900_v48 }
0x1a7f   :  { %4282 = vmatprep.subr.mxu1 %v3899_v49 }
0x1a80   :  { %4283 = vmatpush3.msra.mxu1 %v3899_v49 }
0x1a81   :  { %4284 = vmatprep.subr.mxu1 %v3898_v11 }
0x1a82   :  { %4285 = vmatpush3.msra.mxu1 %v3898_v11 }
0x1b04   :  { %v3509_v36 = vpop.xlane.xlu1 %3508 }
0x1b05   :  { %v3511_v37 = vmul.f32 0.03125, %v3509_v36 }
0x1b06   :  { %v3506_v39 = vpop.xlane.xlu0 %3505 }
0x1b07   :  { %v3510_v41 = vmul.f32 0.03125, %v3506_v39  ;;  %v3513_v38 = vsub.f32 %v3499_v32, %v3511_v37 }
0x1b09   :  { %v3512_v40 = vsub.f32 %v3498_v22, %v3510_v41  ;;  %v3515_v47 = vmul.f32 %v3513_v38, %v3513_v38 }
0x1b0b   :  { %v3514_v44 = vmul.f32 %v3512_v40, %v3512_v40  ;;  %v3519_v10 = vsel %vm86_vm0, %v3515_v47, 0.0 }
0x1b0d   :  { %v3516_v46 = vsel %vm86_vm0, %v3514_v44, 0.0 }
0x1b0e   :  { %3517 = vadd.xlane.f32.xlu0 %v3516_v46  ;;  %v3920_v46 = vld [vmem:[%s5166_s12 + $0x1] ss:$0 sm:$0xff] }
0x1b12   :  { %3520 = vadd.xlane.f32.xlu0 %v3519_v10 }
0x1b97   :  { %v3518_v24 = vpop.xlane.xlu0 %3517 }
0x1b98   :  { %v3522_v53 = vmul.f32 0.03125, %v3518_v24 }
0x1b9a   :  { %v3524_v54 = vadd.f32 1e-05, %v3522_v53 }
0x1b9b   :  { %v3521_v30 = vpop.xlane.xlu0 %3520 }
0x1b9c   :  { %4397 = vrsqrt.f32 %v3524_v54  ;;  %v3523_v55 = vmul.f32 0.03125, %v3521_v30 }
0x1b9e   :  { %v3525_v56 = vadd.f32 1e-05, %v3523_v55 }
0x1ba0   :  { %4399 = vrsqrt.f32 %v3525_v56 }
0x1ba9   :  { %v4398_v57 = vpop.eup %4397 }
0x1baa   :  { %v3528_v58 = vmul.f32 %v4398_v57, %v3512_v40 }
0x1bac   :  { %v3536_v62 = vmul.f32 %v3896_v45, %v3528_v58 }
0x1bad   :  { %v4400_v63 = vpop.eup %4399 }
0x1bae   :  { %v3529_v0 = vmul.f32 %v4400_v63, %v3513_v38  ;;  %v3544_v1 = vadd.f32 %v3897_v60, %v3536_v62 }
0x1bb0   :  { %v3537_v3 = vmul.f32 %v3896_v45, %v3529_v0  ;;  %4286 = vmatprep.mubr.msk.f32.mxu1 %vm86_vm0, %v3544_v1 }
0x1bb2   :  { %v3545_v4 = vadd.f32 %v3897_v60, %v3537_v3 }
0x1bb4   :  { %4287 = vmatmul.mubr.msk.f32.vlgmr.msra.gmra.mxu1 %vm86_vm0, %v3545_v4 }
0x1c74   :  { %v4288_v12 = vpop.f32.mrf.mxu1 }
0x1c75   :  { %v3637_v13 = vadd.f32 %v4288_v12, %v3903_v59 }
0x1c76   :  { %v3631_v14 = vpop.f32.mrf.mxu1 }
0x1c77   :  { %v3632_v15 = vadd.f32 %v3903_v59, %v3631_v14  ;;  %v3641_v17 = vmax.f32 %v3637_v13, 0.0 }
0x1c79   :  { %v3640_v16 = vmax.f32 %v3632_v15, 0.0 }
0x1c7b   :  { %4305 = vmatprep.mubr.msk.f32.mxu0 %vm1804_vm5, %v3640_v16 }
0x1c7c   :  { %4306 = vmatmul.mubr.msk.f32.vlgmr.msra.gmra.mxu0 %vm1804_vm5, %v3641_v17 }
0x1d3c   :  { %v4307_v18 = vpop.f32.mrf.mxu0 }
0x1d3d   :  { %v3737_v19 = vadd.f32 %v4307_v18, %v3915_v61 }
0x1d3e   :  { %v3731_v21 = vpop.f32.mrf.mxu0 }
0x1d3f   :  { %v3732_v23 = vadd.f32 %v3915_v61, %v3731_v21  ;;  %v3741_v25 = vadd.f32 %v3737_v19, %v3545_v4 }
0x1d41   :  { %v3740_v26 = vadd.f32 %v3732_v23, %v3544_v1  ;;  %v3749_v27 = vsel %vm86_vm0, %v3741_v25, 0.0 }
0x1d42   :  { %3750 = vadd.xlane.f32.xlu0 %v3749_v27 }
0x1d43   :  { %v3746_v28 = vsel %vm86_vm0, %v3740_v26, 0.0 }
0x1d44   :  { %3747 = vadd.xlane.f32.xlu1 %v3746_v28 }
0x1dcb   :  { %v3751_v5 = vpop.xlane.xlu0 %3750 }
0x1dcc   :  { %v3753_v20 = vmul.f32 0.03125, %v3751_v5 }
0x1dcd   :  { %v3748_v2 = vpop.xlane.xlu1 %3747 }
0x1dce   :  { %v3755_v29 = vsub.f32 %v3741_v25, %v3753_v20  ;;  %v3752_v31 = vmul.f32 0.03125, %v3748_v2 }
0x1dd0   :  { %v3754_v32 = vsub.f32 %v3740_v26, %v3752_v31  ;;  %v3757_v33 = vmul.f32 %v3755_v29, %v3755_v29 }
0x1dd2   :  { %v3761_v34 = vsel %vm86_vm0, %v3757_v33, 0.0  ;;  %v3756_v22 = vmul.f32 %v3754_v32, %v3754_v32 }
0x1dd3   :  { %3762 = vadd.xlane.f32.xlu0 %v3761_v34 }
0x1dd4   :  { %v3758_v35 = vsel %vm86_vm0, %v3756_v22, 0.0 }
0x1dd5   :  { %3759 = vadd.xlane.f32.xlu1 %v3758_v35 }
0x1e5c   :  { %v3763_v36 = vpop.xlane.xlu0 %3762 }
0x1e5d   :  { %v3765_v37 = vmul.f32 0.03125, %v3763_v36 }
0x1e5e   :  { %v3760_v39 = vpop.xlane.xlu1 %3759 }
0x1e5f   :  { %v3767_v41 = vadd.f32 1e-05, %v3765_v37  ;;  %v3764_v38 = vmul.f32 0.03125, %v3760_v39 }
0x1e61   :  { %4401 = vrsqrt.f32 %v3767_v41  ;;  %v3766_v40 = vadd.f32 1e-05, %v3764_v38 }
0x1e63   :  { %4403 = vrsqrt.f32 %v3766_v40 }
0x1e6e   :  { %v4402_v44 = vpop.eup %4401 }
0x1e6f   :  { %v3771_v47 = vmul.f32 %v4402_v44, %v3755_v29 }
0x1e70   :  { %v4404_v10 = vpop.eup %4403 }
0x1e71   :  { %v3779_v48 = vmul.f32 %v3920_v46, %v3771_v47  ;;  %v3770_v49 = vmul.f32 %v4404_v10, %v3754_v32 }
0x1e73   :  { %v3787_v11 = vadd.f32 %v3921_v42, %v3779_v48  ;;  %v3778_v50 = vmul.f32 %v3920_v46, %v3770_v49 }
0x1e75   :  { %3923 = vst.msk [vmem:[%s5168_s14 + $0x18] sm:$0xff] %vm86_vm0, %v3787_v11  ;;  %v3786_v51 = vadd.f32 %v3921_v42, %v3778_v50 }
0x1e77   :  { %3922 = vst.msk [vmem:[%s5168_s14 + $0x10] sm:$0xff] %vm86_vm0, %v3786_v51 }

</bundles_post_ra>
